<compile_context>
chip_gen: v7x
topology: tpu7x:2x2x1
jax: 0.10.0
libtpu: 0.0.40
codegen_flags: <defaults>
</compile_context>

<pallas_src>
import functools

import jax
import jax.numpy as jnp
from jax import lax
from jax.experimental import pallas as pl
from jax.experimental.pallas import tpu as pltpu


def _round_up(x, m):
    return (x + m - 1) // m * m


def _tile_bytes(sub, lane, itemsize):
    """VMEM footprint of a (sub, lane) tile after (8, 128) padding."""
    return _round_up(max(int(sub), 1), 8) * _round_up(max(int(lane), 1), 128) * itemsize


# ----------------------------- Pallas kernel ---------------------------------
def _edge_conv_kernel(q_ref, kf_ref, idx_ref, *rest, n2_chunk):
    """rest = (w0a, dw0, b0, w1, b1, ..., o_ref); feature tiles are channels-first."""
    o_ref = rest[-1]
    w_refs = rest[:-1]

    c_in, tile_n1 = q_ref.shape[1], q_ref.shape[2]
    n2 = kf_ref.shape[2]
    kg, gw = idx_ref.shape[2], idx_ref.shape[3]
    g_nb = gw // tile_n1                       # neighbours batched per matmul
    c_out = o_ref.shape[1]

    q = q_ref[0]                               # (C, tile_n1) compute dtype
    cdt = q.dtype

    w0a = w_refs[0][...]                       # (c0, C)  neighbour half of layer 0
    dw0 = w_refs[1][...]                       # (c0, C)  W0[:, C:] - W0[:, :C]
    b0 = w_refs[2][...]                        # (c0, 1)  f32 folded BN bias
    n_extra = (len(w_refs) - 3) // 2
    extra = []
    for li in range(n_extra):                  # remaining 1x1 convs, biases pre-widened once
        w_l = w_refs[3 + 2 * li][...]
        b_l = w_refs[4 + 2 * li][...]
        extra.append((w_l, jnp.broadcast_to(b_l, (w_l.shape[0], gw)).astype(jnp.float32)))

    # query half of layer 0 (split-weight identity), shared by all K neighbours
    qterm = jnp.dot(dw0, q, preferred_element_type=jnp.float32) + b0     # (c0, tile_n1) f32
    qterm_w = qterm if g_nb == 1 else jnp.concatenate([qterm] * g_nb, axis=1)

    n_chunks = pl.cdiv(n2, n2_chunk)
    iota_c = lax.broadcasted_iota(jnp.int32, (n2_chunk, gw), 0)          # built once per tile

    def gather(idx_row):
        """One-hot gather of raw key_feature columns -> (C, gw) f32 (exact selection)."""
        if n_chunks == 1:
            sel = (iota_c == idx_row).astype(cdt)                        # (N2, gw)
            return jnp.dot(kf_ref[0], sel, preferred_element_type=jnp.float32)

        def chunk_body(ci, acc):
            base = pl.multiple_of(ci * n2_chunk, 128)
            kf_c = kf_ref[0, :, pl.ds(base, n2_chunk)]                   # (C, n2_chunk)
            sel = (iota_c == (idx_row - base)).astype(cdt)
            return acc + jnp.dot(kf_c, sel, preferred_element_type=jnp.float32)

        return lax.fori_loop(0, n_chunks, chunk_body,
                             jnp.zeros((c_in, gw), jnp.float32))

    def group_body(g, maxacc):
        idx_row = idx_ref[0, 0, pl.ds(g, 1), :]                          # (1, gw) int32
        nb = gather(idx_row).astype(cdt)                                 # (C, gw)
        # layer 0: gathered-neighbour term + precomputed query term, f32 accumulate + ReLU
        x = jnp.maximum(
            jnp.dot(w0a, nb, preferred_element_type=jnp.float32) + qterm_w, 0.0)
        for w_l, b_w in extra:                                           # remaining 1x1 convs
            x = jnp.maximum(
                jnp.dot(w_l, x.astype(cdt), preferred_element_type=jnp.float32) + b_w, 0.0)
        for gg in range(g_nb):                                           # max over the G batch
            maxacc = jnp.maximum(maxacc, x[:, gg * tile_n1:(gg + 1) * tile_n1])
        return maxacc

    # Post-ReLU activations are >= 0, so 0 is a valid identity for the max over K.
    init = jnp.zeros((c_out, tile_n1), jnp.float32)
    if kg == 1:
        maxacc = group_body(0, init)
    else:
        maxacc = lax.fori_loop(0, kg, group_body, init, unroll=2)

    o_ref[0] = maxacc.astype(o_ref.dtype)                                # (c_out, tile_n1)


# ------------------------------- wrapper --------------------------------------
def edge_conv_block(query_feature, key_feature, key_ind, weights, biases,
                    tile_n1=None, compute_dtype=jnp.bfloat16):
    """query_feature (B,C,N1), key_feature (B,C,N2), key_ind (B,N1,K) -> (B,C_out,N1).

    weights[l]: folded conv weight in PyTorch (c_out, c_in) layout; biases[l]: (c_out,).
    """
    b, c, n1 = query_feature.shape
    bk, ck, n2 = key_feature.shape
    assert bk == b and ck == c
    assert key_ind.shape[0] == b and key_ind.shape[1] == n1
    k = key_ind.shape[-1]
    assert k >= 1, "empty neighbour set: max over K=0 is undefined"
    c_out = weights[-1].shape[0]
    out_dtype = query_feature.dtype

    # ---- pad N1 to a multiple of 128: lane-dense tiles/stores, bounded tile size ----
    n1p = _round_up(n1, 128)
    if n1p != n1:
        query_feature = jnp.pad(query_feature, ((0, 0), (0, 0), (0, n1p - n1)))
        key_ind = jnp.pad(key_ind, ((0, 0), (0, n1p - n1), (0, 0)))  # idx 0 is valid; rows discarded

    # ---- generation-aware VMEM budget ----
    vmem_cap = 40 * 1024 * 1024                      # safe on v7x (64 MiB physical VMEM)
    try:
        info = pltpu.get_tpu_info()
        if getattr(info, "vmem_capacity_bytes", 0) >= 128 * 1024 * 1024:
            vmem_cap = 100 * 1024 * 1024             # v5e / v6e: 128 MiB physical
    except Exception:
        pass

    # ---- N2 chunk size for the in-kernel gather (caps iota / one-hot footprint) ----
    n2c = n2
    if n2 > 1024:
        for cand in (1024, 768, 512, 384, 256, 128):
            if n2 % cand == 0:
                n2c = cand
                break
        # TODO(synk): large N2 with no 128-multiple divisor falls back to an unchunked
        #             gather; a masked tail chunk (or pl.ANY + manual DMA) would fix it.

    cdt_bytes = jnp.dtype(compute_dtype).itemsize
    out_bytes = jnp.dtype(out_dtype).itemsize
    chans = [int(w.shape[0]) for w in weights]

    def pick_g(t):
        for g in (4, 2, 1):                          # neighbours batched per gather matmul
            if k % g == 0 and g * t <= 2048:
                return g
        return 1

    def vmem_estimate(t, g):
        gwid = g * t
        kgroups = k // g
        est = 2 * _tile_bytes(c, t, cdt_bytes)                     # query tile (double buffered)
        est += 2 * _tile_bytes(c, n2, cdt_bytes)                   # resident key_feature (worst case)
        est += 2 * _tile_bytes(kgroups, gwid, 4)                   # neighbour indices
        est += 2 * _tile_bytes(c_out, t, out_bytes)                # output tile
        est += _tile_bytes(n2c, gwid, 4)                           # iota
        est += 2 * _tile_bytes(n2c, gwid, cdt_bytes)               # live one-hot (+slack)
        est += _tile_bytes(c, gwid, 4)                             # gather accumulator
        est += _tile_bytes(chans[0], gwid, 4)                      # widened query term
        est += sum(_tile_bytes(cl, gwid, 4) for cl in chans[1:])   # widened biases
        est += 3 * _tile_bytes(max(chans), gwid, 4)                # live activations
        est += _tile_bytes(c_out, t, 4)                            # running max
        est += sum(2 * _tile_bytes(w.shape[0], w.shape[1], cdt_bytes) for w in weights)
        return est

    if tile_n1 is None:
        cands = (1024, 512, 256, 128) if vmem_cap > 64 * 1024 * 1024 else (512, 256, 128)
        tile_n1 = 128
        for cand in cands:
            if n1p % cand == 0 and vmem_estimate(cand, pick_g(cand)) <= (3 * vmem_cap) // 4:
                tile_n1 = cand
                break
    assert n1p % tile_n1 == 0 and tile_n1 % 128 == 0
    g_nb = pick_g(tile_n1)
    kg = k // g_nb
    gw = g_nb * tile_n1
    n_tiles = n1p // tile_n1

    vmem_limit = int(min(vmem_cap,
                         max(32 * 1024 * 1024,
                             (3 * vmem_estimate(tile_n1, g_nb)) // 2 + 4 * 1024 * 1024)))

    # ---- layer-0 split-weight folding (see kernel header); weights stay (c_out, c_in) ----
    w0 = weights[0]                                              # (c0, 2C)
    w0a = w0[:, :c].astype(compute_dtype)                        # neighbour half
    dw0 = (w0[:, c:] - w0[:, :c]).astype(compute_dtype)          # query half
    wb_args = [w0a, dw0, biases[0].reshape(-1, 1).astype(jnp.float32)]
    for w, bb in zip(weights[1:], biases[1:]):
        wb_args += [w.astype(compute_dtype), bb.reshape(-1, 1).astype(jnp.float32)]
    wb_specs = [pl.BlockSpec(a.shape, lambda bi, i: (0, 0)) for a in wb_args]

    q_in = query_feature.astype(compute_dtype)                   # (B, C, N1p)
    kf_in = key_feature.astype(compute_dtype)                    # (B, C, N2)

    # Neighbour indices laid out so each grid step loads one lane-dense (kg, G*tile_n1)
    # block: column g*tile_n1 + t of group gi holds the index of neighbour gi*G + g of
    # point t within the tile.
    idx_t = jnp.transpose(key_ind, (0, 2, 1)).astype(jnp.int32)  # (B, K, N1p)
    idx_wide = idx_t.reshape(b, kg, g_nb, n_tiles, tile_n1)
    idx_wide = jnp.transpose(idx_wide, (0, 3, 1, 2, 4)).reshape(b, n_tiles, kg, gw)

    kernel = functools.partial(_edge_conv_kernel, n2_chunk=n2c)
    grid = (b, n_tiles)

    def build(single_buffer_kf):
        kf_kwargs = dict(pipeline_mode=pl.Buffered(1)) if single_buffer_kf else {}
        return pl.pallas_call(
            kernel,
            out_shape=jax.ShapeDtypeStruct((b, c_out, n1p), out_dtype),
            grid_spec=pltpu.PrefetchScalarGridSpec(
                num_scalar_prefetch=0,
                grid=grid,
                in_specs=[
                    pl.BlockSpec((1, c, tile_n1), lambda bi, i: (bi, 0, i)),          # query tile
                    pl.BlockSpec((1, c, n2), lambda bi, i: (bi, 0, 0), **kf_kwargs),  # resident keys
                    pl.BlockSpec((1, 1, kg, gw), lambda bi, i: (bi, i, 0, 0)),        # neighbour idx
                ] + wb_specs,
                out_specs=pl.BlockSpec((1, c_out, tile_n1), lambda bi, i: (bi, 0, i)),
            ),
            compiler_params=pltpu.CompilerParams(
                dimension_semantics=("parallel", "parallel"),
                vmem_limit_bytes=vmem_limit),
        )

    try:
        out = build(True)(q_in, kf_in, idx_wide, *wb_args)
    except Exception:
        # pl.Buffered(1) single-buffering of the resident key_feature block is an
        # optimization only; fall back to default double buffering if it is rejected.
        out = build(False)(q_in, kf_in, idx_wide, *wb_args)

    return out[:, :, :n1] if n1p != n1 else out                  # (B, C_out, N1)


# --------------------- deterministic parameter construction -------------------
def make_params(in_channels, conv_channels, key, eps=1e-5):
    """Conv2d(1x1, bias=False) + BatchNorm2d (eval) folded into (W_eff (c_out,c_in), b_eff)."""
    weights, biases = [], []
    c_in = in_channels * 2
    for c_out in conv_channels:
        key, k1, k2, k3, k4, k5 = jax.random.split(key, 6)
        w = 0.1 * jax.random.normal(k1, (c_out, c_in), jnp.float32)
        gamma = 1.0 + 0.1 * jax.random.normal(k2, (c_out,), jnp.float32)
        beta = 0.1 * jax.random.normal(k3, (c_out,), jnp.float32)
        rmean = 0.1 * jax.random.normal(k4, (c_out,), jnp.float32)
        rvar = jnp.abs(jax.random.normal(k5, (c_out,), jnp.float32)) + 0.5
        scale = gamma / jnp.sqrt(rvar + eps)
        weights.append(w * scale[:, None])                       # folded, (c_out, c_in)
        biases.append(beta - rmean * scale)                      # (c_out,)
        c_in = c_out
    return weights, biases


# ------------------------------ pure-JAX reference -----------------------------
def reference(query_feature, key_feature, key_ind, weights, biases):
    # group_points: (B,C,N2) gathered with (B,N1,K) -> (B,C,N1,K)
    knn = jax.vmap(lambda kf_b, ind_b: kf_b[:, ind_b])(key_feature, key_ind)
    q = query_feature[:, :, :, None]
    edge = jnp.concatenate([knn - q, jnp.broadcast_to(q, knn.shape)], axis=1)   # (B,2C,N1,K)
    x = edge
    for w, bb in zip(weights, biases):
        x = jnp.maximum(jnp.einsum("oc,bcnk->bonk", w, x) + bb[None, :, None, None], 0.0)
    return x.max(axis=3)                                                        # (B,C_out,N1)


if __name__ == "__main__":
    B, C, N1, N2, K = 2, 4, 16, 16, 8
    conv_channels = (32, 64)

    key = jax.random.PRNGKey(0)
    kq, kk, ki, kp = jax.random.split(key, 4)
    query_feature = jax.random.normal(kq, (B, C, N1), jnp.float32)
    key_feature = jax.random.normal(kk, (B, C, N2), jnp.float32)
    key_ind = jax.random.randint(ki, (B, N1, K), 0, N2, jnp.int32)
    weights, biases = make_params(C, conv_channels, kp)

    ref = reference(query_feature, key_feature, key_ind, weights, biases)

    # f32 streaming path: tight check against the pure-JAX reference
    out_f32 = edge_conv_block(query_feature, key_feature, key_ind, weights, biases,
                              compute_dtype=jnp.float32)
    out_f32 = jax.block_until_ready(out_f32)
    assert out_f32.shape == (B, conv_channels[-1], N1), out_f32.shape
    assert jnp.allclose(out_f32, ref, atol=1e-4, rtol=1e-4), float(jnp.abs(out_f32 - ref).max())

    # default bf16 streaming path (recommended for perf): loosened tolerance
    out_bf16 = edge_conv_block(query_feature, key_feature, key_ind, weights, biases)
    out_bf16 = jax.block_until_ready(out_bf16)
    assert out_bf16.shape == (B, conv_channels[-1], N1), out_bf16.shape
    assert jnp.allclose(out_bf16, ref, atol=1e-1, rtol=1e-1), float(jnp.abs(out_bf16 - ref).max())

    print("KERNEL_OK")
</pallas_src>

<mosaic_0001>
module attributes {stable_mosaic.version = 11 : i64} {
  func.func @_edge_conv_kernel(%arg0: i32, %arg1: i32, %arg2: memref<1x4x128xf32, #tpu.memory_space<vmem>>, %arg3: memref<1x4x16xf32, #tpu.memory_space<vmem>>, %arg4: memref<1x1x2x512xi32, #tpu.memory_space<vmem>>, %arg5: memref<32x4xf32, #tpu.memory_space<vmem>>, %arg6: memref<32x4xf32, #tpu.memory_space<vmem>>, %arg7: memref<32x1xf32, #tpu.memory_space<vmem>>, %arg8: memref<64x32xf32, #tpu.memory_space<vmem>>, %arg9: memref<64x1xf32, #tpu.memory_space<vmem>>, %arg10: memref<1x64x128xf32, #tpu.memory_space<vmem>>) attributes {dimension_semantics = [#tpu.dimension_semantics<parallel>, #tpu.dimension_semantics<parallel>], iteration_bounds = array<i64: 2, 1>, scalar_prefetch = 0 : i64, scratch_operands = 0 : i64, tpu.core_type = #tpu.core_type<tc>, window_params = [{transform_indices = @transform_0, window_bounds = array<i64: 1, 4, 128>}, {pipeline_mode = #tpu.pipeline_mode<synchronous>, transform_indices = @transform_1, window_bounds = array<i64: 1, 4, 16>}, {transform_indices = @transform_2, window_bounds = array<i64: 1, 1, 2, 512>}, {pipeline_mode = #tpu.pipeline_mode<synchronous>, transform_indices = @transform_3, window_bounds = array<i64: 32, 4>}, {pipeline_mode = #tpu.pipeline_mode<synchronous>, transform_indices = @transform_4, window_bounds = array<i64: 32, 4>}, {pipeline_mode = #tpu.pipeline_mode<synchronous>, transform_indices = @transform_5, window_bounds = array<i64: 32, 1>}, {pipeline_mode = #tpu.pipeline_mode<synchronous>, transform_indices = @transform_6, window_bounds = array<i64: 64, 32>}, {pipeline_mode = #tpu.pipeline_mode<synchronous>, transform_indices = @transform_7, window_bounds = array<i64: 64, 1>}, {transform_indices = @transform_8, window_bounds = array<i64: 1, 64, 128>}]} {
    %c0 = arith.constant 0 : index
    %c0_0 = arith.constant 0 : index
    %c0_1 = arith.constant 0 : index
    %0 = vector.load %arg2[%c0, %c0_0, %c0_1] : memref<1x4x128xf32, #tpu.memory_space<vmem>>, vector<1x4x128xf32>
    %1 = vector.shape_cast %0 : vector<1x4x128xf32> to vector<4x128xf32>
    %c0_2 = arith.constant 0 : index
    %c0_3 = arith.constant 0 : index
    %2 = vector.load %arg5[%c0_2, %c0_3] : memref<32x4xf32, #tpu.memory_space<vmem>>, vector<32x4xf32>
    %c0_4 = arith.constant 0 : index
    %c0_5 = arith.constant 0 : index
    %3 = vector.load %arg6[%c0_4, %c0_5] : memref<32x4xf32, #tpu.memory_space<vmem>>, vector<32x4xf32>
    %c0_6 = arith.constant 0 : index
    %c0_7 = arith.constant 0 : index
    %4 = vector.load %arg7[%c0_6, %c0_7] : memref<32x1xf32, #tpu.memory_space<vmem>>, vector<32x1xf32>
    %c0_8 = arith.constant 0 : index
    %c0_9 = arith.constant 0 : index
    %5 = vector.load %arg8[%c0_8, %c0_9] : memref<64x32xf32, #tpu.memory_space<vmem>>, vector<64x32xf32>
    %c0_10 = arith.constant 0 : index
    %c0_11 = arith.constant 0 : index
    %6 = vector.load %arg9[%c0_10, %c0_11] : memref<64x1xf32, #tpu.memory_space<vmem>>, vector<64x1xf32>
    %7 = vector.shape_cast %6 : vector<64x1xf32> to vector<64x1xf32>
    %8 = vector.broadcast %7 : vector<64x1xf32> to vector<64x512xf32>
    %cst = arith.constant dense<0.000000e+00> : vector<32x128xf32>
    %9 = tpu.matmul %3, %1, %cst {dimension_numbers = #tpu.dot_dimension_numbers<[1], [0], [0], [1], [0, 0, 1, 1], [], []>} : vector<32x4xf32>, vector<4x128xf32>, vector<32x128xf32> -> vector<32x128xf32>
    %10 = vector.broadcast %4 : vector<32x1xf32> to vector<32x128xf32>
    %11 = arith.addf %9, %10 : vector<32x128xf32>
    %12 = tpu.concatenate %11, %11, %11, %11 in 1 : vector<32x128xf32>, vector<32x128xf32>, vector<32x128xf32>, vector<32x128xf32> -> vector<32x512xf32>
    %13 = tpu.iota {dimensions = array<i32: 0>} : vector<16x512xi32>
    %cst_12 = arith.constant 0.000000e+00 : f32
    %14 = vector.broadcast %cst_12 : f32 to vector<64x128xf32>
    %c0_i32 = arith.constant 0 : i32
    %c0_13 = arith.constant 0 : index
    %c0_14 = arith.constant 0 : index
    %15 = arith.index_cast %c0_i32 : i32 to index
    %c0_15 = arith.constant 0 : index
    %16 = vector.load %arg4[%c0_13, %c0_14, %15, %c0_15] : memref<1x1x2x512xi32, #tpu.memory_space<vmem>>, vector<1x1x1x512xi32>
    %17 = vector.shape_cast %16 : vector<1x1x1x512xi32> to vector<1x512xi32>
    %18 = vector.broadcast %17 : vector<1x512xi32> to vector<16x512xi32>
    %19 = arith.cmpi eq, %13, %18 : vector<16x512xi32>
    %20 = arith.extui %19 : vector<16x512xi1> to vector<16x512xi32>
    %21 = arith.sitofp %20 : vector<16x512xi32> to vector<16x512xf32>
    %c0_16 = arith.constant 0 : index
    %c0_17 = arith.constant 0 : index
    %c0_18 = arith.constant 0 : index
    %22 = vector.load %arg3[%c0_16, %c0_17, %c0_18] : memref<1x4x16xf32, #tpu.memory_space<vmem>>, vector<1x4x16xf32>
    %23 = vector.shape_cast %22 : vector<1x4x16xf32> to vector<4x16xf32>
    %cst_19 = arith.constant dense<0.000000e+00> : vector<4x512xf32>
    %24 = tpu.matmul %23, %21, %cst_19 {dimension_numbers = #tpu.dot_dimension_numbers<[1], [0], [0], [1], [0, 0, 1, 1], [], []>} : vector<4x16xf32>, vector<16x512xf32>, vector<4x512xf32> -> vector<4x512xf32>
    %cst_20 = arith.constant dense<0.000000e+00> : vector<32x512xf32>
    %25 = tpu.matmul %2, %24, %cst_20 {dimension_numbers = #tpu.dot_dimension_numbers<[1], [0], [0], [1], [0, 0, 1, 1], [], []>} : vector<32x4xf32>, vector<4x512xf32>, vector<32x512xf32> -> vector<32x512xf32>
    %26 = arith.addf %25, %12 : vector<32x512xf32>
    %cst_21 = arith.constant 0.000000e+00 : f32
    %27 = vector.broadcast %cst_21 : f32 to vector<32x512xf32>
    %28 = arith.maximumf %26, %27 : vector<32x512xf32>
    %cst_22 = arith.constant dense<0.000000e+00> : vector<64x512xf32>
    %29 = tpu.matmul %5, %28, %cst_22 {dimension_numbers = #tpu.dot_dimension_numbers<[1], [0], [0], [1], [0, 0, 1, 1], [], []>} : vector<64x32xf32>, vector<32x512xf32>, vector<64x512xf32> -> vector<64x512xf32>
    %30 = arith.addf %29, %8 : vector<64x512xf32>
    %cst_23 = arith.constant 0.000000e+00 : f32
    %31 = vector.broadcast %cst_23 : f32 to vector<64x512xf32>
    %32 = arith.maximumf %30, %31 : vector<64x512xf32>
    %33 = vector.extract_strided_slice %32 {offsets = [0, 0], sizes = [64, 128], strides = [1, 1]} : vector<64x512xf32> to vector<64x128xf32>
    %34 = arith.maximumf %14, %33 : vector<64x128xf32>
    %35 = vector.extract_strided_slice %32 {offsets = [0, 128], sizes = [64, 128], strides = [1, 1]} : vector<64x512xf32> to vector<64x128xf32>
    %36 = arith.maximumf %34, %35 : vector<64x128xf32>
    %37 = vector.extract_strided_slice %32 {offsets = [0, 256], sizes = [64, 128], strides = [1, 1]} : vector<64x512xf32> to vector<64x128xf32>
    %38 = arith.maximumf %36, %37 : vector<64x128xf32>
    %39 = vector.extract_strided_slice %32 {offsets = [0, 384], sizes = [64, 128], strides = [1, 1]} : vector<64x512xf32> to vector<64x128xf32>
    %40 = arith.maximumf %38, %39 : vector<64x128xf32>
    %c1_i32 = arith.constant 1 : i32
    %c0_24 = arith.constant 0 : index
    %c0_25 = arith.constant 0 : index
    %41 = arith.index_cast %c1_i32 : i32 to index
    %c0_26 = arith.constant 0 : index
    %42 = vector.load %arg4[%c0_24, %c0_25, %41, %c0_26] : memref<1x1x2x512xi32, #tpu.memory_space<vmem>>, vector<1x1x1x512xi32>
    %43 = vector.shape_cast %42 : vector<1x1x1x512xi32> to vector<1x512xi32>
    %44 = vector.broadcast %43 : vector<1x512xi32> to vector<16x512xi32>
    %45 = arith.cmpi eq, %13, %44 : vector<16x512xi32>
    %46 = arith.extui %45 : vector<16x512xi1> to vector<16x512xi32>
    %47 = arith.sitofp %46 : vector<16x512xi32> to vector<16x512xf32>
    %c0_27 = arith.constant 0 : index
    %c0_28 = arith.constant 0 : index
    %c0_29 = arith.constant 0 : index
    %48 = vector.load %arg3[%c0_27, %c0_28, %c0_29] : memref<1x4x16xf32, #tpu.memory_space<vmem>>, vector<1x4x16xf32>
    %49 = vector.shape_cast %48 : vector<1x4x16xf32> to vector<4x16xf32>
    %cst_30 = arith.constant dense<0.000000e+00> : vector<4x512xf32>
    %50 = tpu.matmul %49, %47, %cst_30 {dimension_numbers = #tpu.dot_dimension_numbers<[1], [0], [0], [1], [0, 0, 1, 1], [], []>} : vector<4x16xf32>, vector<16x512xf32>, vector<4x512xf32> -> vector<4x512xf32>
    %cst_31 = arith.constant dense<0.000000e+00> : vector<32x512xf32>
    %51 = tpu.matmul %2, %50, %cst_31 {dimension_numbers = #tpu.dot_dimension_numbers<[1], [0], [0], [1], [0, 0, 1, 1], [], []>} : vector<32x4xf32>, vector<4x512xf32>, vector<32x512xf32> -> vector<32x512xf32>
    %52 = arith.addf %51, %12 : vector<32x512xf32>
    %cst_32 = arith.constant 0.000000e+00 : f32
    %53 = vector.broadcast %cst_32 : f32 to vector<32x512xf32>
    %54 = arith.maximumf %52, %53 : vector<32x512xf32>
    %cst_33 = arith.constant dense<0.000000e+00> : vector<64x512xf32>
    %55 = tpu.matmul %5, %54, %cst_33 {dimension_numbers = #tpu.dot_dimension_numbers<[1], [0], [0], [1], [0, 0, 1, 1], [], []>} : vector<64x32xf32>, vector<32x512xf32>, vector<64x512xf32> -> vector<64x512xf32>
    %56 = arith.addf %55, %8 : vector<64x512xf32>
    %cst_34 = arith.constant 0.000000e+00 : f32
    %57 = vector.broadcast %cst_34 : f32 to vector<64x512xf32>
    %58 = arith.maximumf %56, %57 : vector<64x512xf32>
    %59 = vector.extract_strided_slice %58 {offsets = [0, 0], sizes = [64, 128], strides = [1, 1]} : vector<64x512xf32> to vector<64x128xf32>
    %60 = arith.maximumf %40, %59 : vector<64x128xf32>
    %61 = vector.extract_strided_slice %58 {offsets = [0, 128], sizes = [64, 128], strides = [1, 1]} : vector<64x512xf32> to vector<64x128xf32>
    %62 = arith.maximumf %60, %61 : vector<64x128xf32>
    %63 = vector.extract_strided_slice %58 {offsets = [0, 256], sizes = [64, 128], strides = [1, 1]} : vector<64x512xf32> to vector<64x128xf32>
    %64 = arith.maximumf %62, %63 : vector<64x128xf32>
    %65 = vector.extract_strided_slice %58 {offsets = [0, 384], sizes = [64, 128], strides = [1, 1]} : vector<64x512xf32> to vector<64x128xf32>
    %66 = arith.maximumf %64, %65 : vector<64x128xf32>
    %c2_i32 = arith.constant 2 : i32
    %c0_35 = arith.constant 0 : index
    %c0_36 = arith.constant 0 : index
    %c0_37 = arith.constant 0 : index
    %67 = vector.load %arg10[%c0_35, %c0_36, %c0_37] : memref<1x64x128xf32, #tpu.memory_space<vmem>>, vector<1x64x128xf32>
    %68 = vector.shape_cast %67 : vector<1x64x128xf32> to vector<64x128xf32>
    %69 = vector.shape_cast %66 : vector<64x128xf32> to vector<1x64x128xf32>
    tpu.vector_store %arg10[%c0_35, %c0_36, %c0_37], %69 {strides = array<i32>} : memref<1x64x128xf32, #tpu.memory_space<vmem>>, vector<1x64x128xf32>,
    return
  }
  func.func @transform_0(%arg0: i32, %arg1: i32) -> (i32, i32, i32) {
    %c0_i32 = arith.constant 0 : i32
    %c0_i32_0 = arith.constant 0 : i32
    return %arg0, %c0_i32, %arg1 : i32, i32, i32
  }
  func.func @transform_1(%arg0: i32, %arg1: i32) -> (i32, i32, i32) {
    %c0_i32 = arith.constant 0 : i32
    %c0_i32_0 = arith.constant 0 : i32
    %c0_i32_1 = arith.constant 0 : i32
    return %arg0, %c0_i32, %c0_i32_0 : i32, i32, i32
  }
  func.func @transform_2(%arg0: i32, %arg1: i32) -> (i32, i32, i32, i32) {
    %c0_i32 = arith.constant 0 : i32
    %c0_i32_0 = arith.constant 0 : i32
    %c0_i32_1 = arith.constant 0 : i32
    return %arg0, %arg1, %c0_i32, %c0_i32_0 : i32, i32, i32, i32
  }
  func.func @transform_3(%arg0: i32, %arg1: i32) -> (i32, i32) {
    %c0_i32 = arith.constant 0 : i32
    %c0_i32_0 = arith.constant 0 : i32
    %c0_i32_1 = arith.constant 0 : i32
    return %c0_i32, %c0_i32_0 : i32, i32
  }
  func.func @transform_4(%arg0: i32, %arg1: i32) -> (i32, i32) {
    %c0_i32 = arith.constant 0 : i32
    %c0_i32_0 = arith.constant 0 : i32
    %c0_i32_1 = arith.constant 0 : i32
    return %c0_i32, %c0_i32_0 : i32, i32
  }
  func.func @transform_5(%arg0: i32, %arg1: i32) -> (i32, i32) {
    %c0_i32 = arith.constant 0 : i32
    %c0_i32_0 = arith.constant 0 : i32
    %c0_i32_1 = arith.constant 0 : i32
    return %c0_i32, %c0_i32_0 : i32, i32
  }
  func.func @transform_6(%arg0: i32, %arg1: i32) -> (i32, i32) {
    %c0_i32 = arith.constant 0 : i32
    %c0_i32_0 = arith.constant 0 : i32
    %c0_i32_1 = arith.constant 0 : i32
    return %c0_i32, %c0_i32_0 : i32, i32
  }
  func.func @transform_7(%arg0: i32, %arg1: i32) -> (i32, i32) {
    %c0_i32 = arith.constant 0 : i32
    %c0_i32_0 = arith.constant 0 : i32
    %c0_i32_1 = arith.constant 0 : i32
    return %c0_i32, %c0_i32_0 : i32, i32
  }
  func.func @transform_8(%arg0: i32, %arg1: i32) -> (i32, i32, i32) {
    %c0_i32 = arith.constant 0 : i32
    %c0_i32_0 = arith.constant 0 : i32
    return %arg0, %c0_i32, %arg1 : i32, i32, i32
  }
}

module attributes {stable_mosaic.version = 11 : i64} {
  func.func @_edge_conv_kernel(%arg0: i32, %arg1: i32, %arg2: memref<1x4x128xf32, #tpu.memory_space<vmem>>, %arg3: memref<1x4x16xf32, #tpu.memory_space<vmem>>, %arg4: memref<1x1x2x512xi32, #tpu.memory_space<vmem>>, %arg5: memref<32x4xf32, #tpu.memory_space<vmem>>, %arg6: memref<32x4xf32, #tpu.memory_space<vmem>>, %arg7: memref<32x1xf32, #tpu.memory_space<vmem>>, %arg8: memref<64x32xf32, #tpu.memory_space<vmem>>, %arg9: memref<64x1xf32, #tpu.memory_space<vmem>>, %arg10: memref<1x64x128xf32, #tpu.memory_space<vmem>>) attributes {dimension_semantics = [#tpu.dimension_semantics<parallel>, #tpu.dimension_semantics<parallel>], iteration_bounds = array<i64: 2, 1>, scalar_prefetch = 0 : i64, scratch_operands = 0 : i64, tpu.core_type = #tpu.core_type<tc>, window_params = [{transform_indices = @transform_0, window_bounds = array<i64: 1, 4, 128>}, {transform_indices = @transform_1, window_bounds = array<i64: 1, 4, 16>}, {transform_indices = @transform_2, window_bounds = array<i64: 1, 1, 2, 512>}, {pipeline_mode = #tpu.pipeline_mode<synchronous>, transform_indices = @transform_3, window_bounds = array<i64: 32, 4>}, {pipeline_mode = #tpu.pipeline_mode<synchronous>, transform_indices = @transform_4, window_bounds = array<i64: 32, 4>}, {pipeline_mode = #tpu.pipeline_mode<synchronous>, transform_indices = @transform_5, window_bounds = array<i64: 32, 1>}, {pipeline_mode = #tpu.pipeline_mode<synchronous>, transform_indices = @transform_6, window_bounds = array<i64: 64, 32>}, {pipeline_mode = #tpu.pipeline_mode<synchronous>, transform_indices = @transform_7, window_bounds = array<i64: 64, 1>}, {transform_indices = @transform_8, window_bounds = array<i64: 1, 64, 128>}]} {
    %c0 = arith.constant 0 : index
    %c0_0 = arith.constant 0 : index
    %c0_1 = arith.constant 0 : index
    %0 = vector.load %arg2[%c0, %c0_0, %c0_1] : memref<1x4x128xf32, #tpu.memory_space<vmem>>, vector<1x4x128xf32>
    %1 = vector.shape_cast %0 : vector<1x4x128xf32> to vector<4x128xf32>
    %c0_2 = arith.constant 0 : index
    %c0_3 = arith.constant 0 : index
    %2 = vector.load %arg5[%c0_2, %c0_3] : memref<32x4xf32, #tpu.memory_space<vmem>>, vector<32x4xf32>
    %c0_4 = arith.constant 0 : index
    %c0_5 = arith.constant 0 : index
    %3 = vector.load %arg6[%c0_4, %c0_5] : memref<32x4xf32, #tpu.memory_space<vmem>>, vector<32x4xf32>
    %c0_6 = arith.constant 0 : index
    %c0_7 = arith.constant 0 : index
    %4 = vector.load %arg7[%c0_6, %c0_7] : memref<32x1xf32, #tpu.memory_space<vmem>>, vector<32x1xf32>
    %c0_8 = arith.constant 0 : index
    %c0_9 = arith.constant 0 : index
    %5 = vector.load %arg8[%c0_8, %c0_9] : memref<64x32xf32, #tpu.memory_space<vmem>>, vector<64x32xf32>
    %c0_10 = arith.constant 0 : index
    %c0_11 = arith.constant 0 : index
    %6 = vector.load %arg9[%c0_10, %c0_11] : memref<64x1xf32, #tpu.memory_space<vmem>>, vector<64x1xf32>
    %7 = vector.shape_cast %6 : vector<64x1xf32> to vector<64x1xf32>
    %8 = vector.broadcast %7 : vector<64x1xf32> to vector<64x512xf32>
    %cst = arith.constant dense<0.000000e+00> : vector<32x128xf32>
    %9 = tpu.matmul %3, %1, %cst {dimension_numbers = #tpu.dot_dimension_numbers<[1], [0], [0], [1], [0, 0, 1, 1], [], []>} : vector<32x4xf32>, vector<4x128xf32>, vector<32x128xf32> -> vector<32x128xf32>
    %10 = vector.broadcast %4 : vector<32x1xf32> to vector<32x128xf32>
    %11 = arith.addf %9, %10 : vector<32x128xf32>
    %12 = tpu.concatenate %11, %11, %11, %11 in 1 : vector<32x128xf32>, vector<32x128xf32>, vector<32x128xf32>, vector<32x128xf32> -> vector<32x512xf32>
    %13 = tpu.iota {dimensions = array<i32: 0>} : vector<16x512xi32>
    %cst_12 = arith.constant 0.000000e+00 : f32
    %14 = vector.broadcast %cst_12 : f32 to vector<64x128xf32>
    %c0_i32 = arith.constant 0 : i32
    %c0_13 = arith.constant 0 : index
    %c0_14 = arith.constant 0 : index
    %15 = arith.index_cast %c0_i32 : i32 to index
    %c0_15 = arith.constant 0 : index
    %16 = vector.load %arg4[%c0_13, %c0_14, %15, %c0_15] : memref<1x1x2x512xi32, #tpu.memory_space<vmem>>, vector<1x1x1x512xi32>
    %17 = vector.shape_cast %16 : vector<1x1x1x512xi32> to vector<1x512xi32>
    %18 = vector.broadcast %17 : vector<1x512xi32> to vector<16x512xi32>
    %19 = arith.cmpi eq, %13, %18 : vector<16x512xi32>
    %20 = arith.extui %19 : vector<16x512xi1> to vector<16x512xi32>
    %21 = arith.sitofp %20 : vector<16x512xi32> to vector<16x512xf32>
    %c0_16 = arith.constant 0 : index
    %c0_17 = arith.constant 0 : index
    %c0_18 = arith.constant 0 : index
    %22 = vector.load %arg3[%c0_16, %c0_17, %c0_18] : memref<1x4x16xf32, #tpu.memory_space<vmem>>, vector<1x4x16xf32>
    %23 = vector.shape_cast %22 : vector<1x4x16xf32> to vector<4x16xf32>
    %cst_19 = arith.constant dense<0.000000e+00> : vector<4x512xf32>
    %24 = tpu.matmul %23, %21, %cst_19 {dimension_numbers = #tpu.dot_dimension_numbers<[1], [0], [0], [1], [0, 0, 1, 1], [], []>} : vector<4x16xf32>, vector<16x512xf32>, vector<4x512xf32> -> vector<4x512xf32>
    %cst_20 = arith.constant dense<0.000000e+00> : vector<32x512xf32>
    %25 = tpu.matmul %2, %24, %cst_20 {dimension_numbers = #tpu.dot_dimension_numbers<[1], [0], [0], [1], [0, 0, 1, 1], [], []>} : vector<32x4xf32>, vector<4x512xf32>, vector<32x512xf32> -> vector<32x512xf32>
    %26 = arith.addf %25, %12 : vector<32x512xf32>
    %cst_21 = arith.constant 0.000000e+00 : f32
    %27 = vector.broadcast %cst_21 : f32 to vector<32x512xf32>
    %28 = arith.maximumf %26, %27 : vector<32x512xf32>
    %cst_22 = arith.constant dense<0.000000e+00> : vector<64x512xf32>
    %29 = tpu.matmul %5, %28, %cst_22 {dimension_numbers = #tpu.dot_dimension_numbers<[1], [0], [0], [1], [0, 0, 1, 1], [], []>} : vector<64x32xf32>, vector<32x512xf32>, vector<64x512xf32> -> vector<64x512xf32>
    %30 = arith.addf %29, %8 : vector<64x512xf32>
    %cst_23 = arith.constant 0.000000e+00 : f32
    %31 = vector.broadcast %cst_23 : f32 to vector<64x512xf32>
    %32 = arith.maximumf %30, %31 : vector<64x512xf32>
    %33 = vector.extract_strided_slice %32 {offsets = [0, 0], sizes = [64, 128], strides = [1, 1]} : vector<64x512xf32> to vector<64x128xf32>
    %34 = arith.maximumf %14, %33 : vector<64x128xf32>
    %35 = vector.extract_strided_slice %32 {offsets = [0, 128], sizes = [64, 128], strides = [1, 1]} : vector<64x512xf32> to vector<64x128xf32>
    %36 = arith.maximumf %34, %35 : vector<64x128xf32>
    %37 = vector.extract_strided_slice %32 {offsets = [0, 256], sizes = [64, 128], strides = [1, 1]} : vector<64x512xf32> to vector<64x128xf32>
    %38 = arith.maximumf %36, %37 : vector<64x128xf32>
    %39 = vector.extract_strided_slice %32 {offsets = [0, 384], sizes = [64, 128], strides = [1, 1]} : vector<64x512xf32> to vector<64x128xf32>
    %40 = arith.maximumf %38, %39 : vector<64x128xf32>
    %c1_i32 = arith.constant 1 : i32
    %c0_24 = arith.constant 0 : index
    %c0_25 = arith.constant 0 : index
    %41 = arith.index_cast %c1_i32 : i32 to index
    %c0_26 = arith.constant 0 : index
    %42 = vector.load %arg4[%c0_24, %c0_25, %41, %c0_26] : memref<1x1x2x512xi32, #tpu.memory_space<vmem>>, vector<1x1x1x512xi32>
    %43 = vector.shape_cast %42 : vector<1x1x1x512xi32> to vector<1x512xi32>
    %44 = vector.broadcast %43 : vector<1x512xi32> to vector<16x512xi32>
    %45 = arith.cmpi eq, %13, %44 : vector<16x512xi32>
    %46 = arith.extui %45 : vector<16x512xi1> to vector<16x512xi32>
    %47 = arith.sitofp %46 : vector<16x512xi32> to vector<16x512xf32>
    %c0_27 = arith.constant 0 : index
    %c0_28 = arith.constant 0 : index
    %c0_29 = arith.constant 0 : index
    %48 = vector.load %arg3[%c0_27, %c0_28, %c0_29] : memref<1x4x16xf32, #tpu.memory_space<vmem>>, vector<1x4x16xf32>
    %49 = vector.shape_cast %48 : vector<1x4x16xf32> to vector<4x16xf32>
    %cst_30 = arith.constant dense<0.000000e+00> : vector<4x512xf32>
    %50 = tpu.matmul %49, %47, %cst_30 {dimension_numbers = #tpu.dot_dimension_numbers<[1], [0], [0], [1], [0, 0, 1, 1], [], []>} : vector<4x16xf32>, vector<16x512xf32>, vector<4x512xf32> -> vector<4x512xf32>
    %cst_31 = arith.constant dense<0.000000e+00> : vector<32x512xf32>
    %51 = tpu.matmul %2, %50, %cst_31 {dimension_numbers = #tpu.dot_dimension_numbers<[1], [0], [0], [1], [0, 0, 1, 1], [], []>} : vector<32x4xf32>, vector<4x512xf32>, vector<32x512xf32> -> vector<32x512xf32>
    %52 = arith.addf %51, %12 : vector<32x512xf32>
    %cst_32 = arith.constant 0.000000e+00 : f32
    %53 = vector.broadcast %cst_32 : f32 to vector<32x512xf32>
    %54 = arith.maximumf %52, %53 : vector<32x512xf32>
    %cst_33 = arith.constant dense<0.000000e+00> : vector<64x512xf32>
    %55 = tpu.matmul %5, %54, %cst_33 {dimension_numbers = #tpu.dot_dimension_numbers<[1], [0], [0], [1], [0, 0, 1, 1], [], []>} : vector<64x32xf32>, vector<32x512xf32>, vector<64x512xf32> -> vector<64x512xf32>
    %56 = arith.addf %55, %8 : vector<64x512xf32>
    %cst_34 = arith.constant 0.000000e+00 : f32
    %57 = vector.broadcast %cst_34 : f32 to vector<64x512xf32>
    %58 = arith.maximumf %56, %57 : vector<64x512xf32>
    %59 = vector.extract_strided_slice %58 {offsets = [0, 0], sizes = [64, 128], strides = [1, 1]} : vector<64x512xf32> to vector<64x128xf32>
    %60 = arith.maximumf %40, %59 : vector<64x128xf32>
    %61 = vector.extract_strided_slice %58 {offsets = [0, 128], sizes = [64, 128], strides = [1, 1]} : vector<64x512xf32> to vector<64x128xf32>
    %62 = arith.maximumf %60, %61 : vector<64x128xf32>
    %63 = vector.extract_strided_slice %58 {offsets = [0, 256], sizes = [64, 128], strides = [1, 1]} : vector<64x512xf32> to vector<64x128xf32>
    %64 = arith.maximumf %62, %63 : vector<64x128xf32>
    %65 = vector.extract_strided_slice %58 {offsets = [0, 384], sizes = [64, 128], strides = [1, 1]} : vector<64x512xf32> to vector<64x128xf32>
    %66 = arith.maximumf %64, %65 : vector<64x128xf32>
    %c2_i32 = arith.constant 2 : i32
    %c0_35 = arith.constant 0 : index
    %c0_36 = arith.constant 0 : index
    %c0_37 = arith.constant 0 : index
    %67 = vector.load %arg10[%c0_35, %c0_36, %c0_37] : memref<1x64x128xf32, #tpu.memory_space<vmem>>, vector<1x64x128xf32>
    %68 = vector.shape_cast %67 : vector<1x64x128xf32> to vector<64x128xf32>
    %69 = vector.shape_cast %66 : vector<64x128xf32> to vector<1x64x128xf32>
    tpu.vector_store %arg10[%c0_35, %c0_36, %c0_37], %69 {strides = array<i32>} : memref<1x64x128xf32, #tpu.memory_space<vmem>>, vector<1x64x128xf32>,
    return
  }
  func.func @transform_0(%arg0: i32, %arg1: i32) -> (i32, i32, i32) {
    %c0_i32 = arith.constant 0 : i32
    %c0_i32_0 = arith.constant 0 : i32
    return %arg0, %c0_i32, %arg1 : i32, i32, i32
  }
  func.func @transform_1(%arg0: i32, %arg1: i32) -> (i32, i32, i32) {
    %c0_i32 = arith.constant 0 : i32
    %c0_i32_0 = arith.constant 0 : i32
    %c0_i32_1 = arith.constant 0 : i32
    return %arg0, %c0_i32, %c0_i32_0 : i32, i32, i32
  }
  func.func @transform_2(%arg0: i32, %arg1: i32) -> (i32, i32, i32, i32) {
    %c0_i32 = arith.constant 0 : i32
    %c0_i32_0 = arith.constant 0 : i32
    %c0_i32_1 = arith.constant 0 : i32
    return %arg0, %arg1, %c0_i32, %c0_i32_0 : i32, i32, i32, i32
  }
  func.func @transform_3(%arg0: i32, %arg1: i32) -> (i32, i32) {
    %c0_i32 = arith.constant 0 : i32
    %c0_i32_0 = arith.constant 0 : i32
    %c0_i32_1 = arith.constant 0 : i32
    return %c0_i32, %c0_i32_0 : i32, i32
  }
  func.func @transform_4(%arg0: i32, %arg1: i32) -> (i32, i32) {
    %c0_i32 = arith.constant 0 : i32
    %c0_i32_0 = arith.constant 0 : i32
    %c0_i32_1 = arith.constant 0 : i32
    return %c0_i32, %c0_i32_0 : i32, i32
  }
  func.func @transform_5(%arg0: i32, %arg1: i32) -> (i32, i32) {
    %c0_i32 = arith.constant 0 : i32
    %c0_i32_0 = arith.constant 0 : i32
    %c0_i32_1 = arith.constant 0 : i32
    return %c0_i32, %c0_i32_0 : i32, i32
  }
  func.func @transform_6(%arg0: i32, %arg1: i32) -> (i32, i32) {
    %c0_i32 = arith.constant 0 : i32
    %c0_i32_0 = arith.constant 0 : i32
    %c0_i32_1 = arith.constant 0 : i32
    return %c0_i32, %c0_i32_0 : i32, i32
  }
  func.func @transform_7(%arg0: i32, %arg1: i32) -> (i32, i32) {
    %c0_i32 = arith.constant 0 : i32
    %c0_i32_0 = arith.constant 0 : i32
    %c0_i32_1 = arith.constant 0 : i32
    return %c0_i32, %c0_i32_0 : i32, i32
  }
  func.func @transform_8(%arg0: i32, %arg1: i32) -> (i32, i32, i32) {
    %c0_i32 = arith.constant 0 : i32
    %c0_i32_0 = arith.constant 0 : i32
    return %arg0, %c0_i32, %arg1 : i32, i32, i32
  }
}

</mosaic_0001>

<bundles_post_ra>
// kernel: tpu_custom_call.1
= control target key start
LH: loop header
LB: loop body
LE: loop exit
PB: predicated region body
PF: predicated region fallthrough
CT: control target
= control target key end

     0   :  { %13 = vsyncpa [#allocation3], 0  ;;  %s3097_s0 = inlined_call_operand.vmem [shape: f32[2,4,128], index: 0, kind: input, shape index: {}]   ;;  %s3098_s1 = inlined_call_operand.vmem [shape: f32[2,4,16], index: 1, kind: input, shape index: {}]   ;;  %s3099_s2 = inlined_call_operand.vmem [shape: s32[2,1,2,512], index: 2, kind: input, shape index: {}]   ;;  %s3100_s3 = inlined_call_operand.vmem [shape: f32[32,4], index: 3, kind: input, shape index: {}]   ;;  %s3101_s4 = inlined_call_operand.vmem [shape: f32[32,4], index: 4, kind: input, shape index: {}]   ;;  %s3102_s5 = inlined_call_operand.vmem [shape: f32[32,1], index: 5, kind: input, shape index: {}]   ;;  %s3103_s6 = inlined_call_operand.vmem [shape: f32[64,32], index: 6, kind: input, shape index: {}]   ;;  %s3104_s7 = inlined_call_operand.vmem [shape: f32[64,1], index: 7, kind: input, shape index: {}]   ;;  %s3105_s8 = inlined_call_operand.hbm [shape: f32[2,64,128], index: 8, kind: output, shape index: {}]  }
   0x1   :  { %15 = vsyncpa [#allocation3 + $0x1], 0  ;;  %s2475_s27 = smov 0   ;;  %s2477_s28 = smov 0  }
   0x2   :  { %s2479_s29 = smov 0   ;;  %s2481_s30 = smov 0  }
   0x3   :  { %s2483_s9 = smov 0   ;;  %s2485_s10 = smov 0  }
   0x4 LB: > { %s2106_s11 = sadd.s32 4294967295, %s2422_s10   ;;  %s2107_s12 = sadd.s32 4294967294, %s2422_s10   ;;  %s2422_s10 = sphi %s2485_s10, %s21_s10   ;;  %s2418_s9 = sphi %s2483_s9, %s3112_s9   ;;  %s2414_s30 = sphi %s2481_s30, %s3111_s30   ;;  %s2410_s29 = sphi %s2479_s29, %s3110_s29   ;;  %s2406_s28 = sphi %s2477_s28, %s3109_s28   ;;  %s2402_s27 = sphi %s2475_s27, %s3108_s27  }
   0x5   : > { %s33_s13 = sadd.s32 1, %s2418_s9  ;;  %s229_s14 = sadd.s32 1, %s2410_s29 }
   0x6   : > { %p35_p0 = scmp.ge.s32.totalorder %s33_s13, 2  ;;  %p239_p1 = scmp.ne.s32.totalorder %s2410_s29, %s2406_s28 }
   0x7   : > { %p240_p2 = scmp.eq.s32.totalorder %s2106_s11, 1  ;;  %p245_p3 = scmp.ne.s32.totalorder %s2406_s28, %s2402_s27 }
   0x8   : > { %s3114_s13 = smov (%p35_p0, %s33_s13), 0  ;;  %p246_p5 = scmp.eq.s32.totalorder %s2107_s12, 1 }
   0x9   : > { %p2515_p4 = por %p240_p2, %p239_p1  ;;  %s224_s16 = ssub.s32 %s2418_s9, %s3114_s13 }
   0xa   : > { %p2110_p6 = scmp.ge.s32.totalorder %s2422_s10, 1  ;;  %p227_p7 = scmp.eq.s32.totalorder %s224_s16, 0 }
   0xb   : > { %p2522_p8 = por %p246_p5, %p245_p3  ;;  %p308_p9 = scmp.lt.s32.totalorder %s2422_s10, 3 }
   0xc   : > { %s2528_s18 = scalar_select %p227_p7, %s2410_s29, %s229_s14  }
   0xd   : > { %p309_p10 = pnand %p2110_p6, %p308_p9 }
   0xe   : > { %p357_p11 = scmp.lt.s32.totalorder (!%p309_p10), %s2414_s30, 1  ;;  %v568_v0 = vlaneseq (!%p309_p10)  ;;  %v382_v1 = vld [vmem:[%s3101_s4] sm:$0xff] (!%p309_p10)  ;;  %v2424_v2 = vmov (!%p309_p10), 0.0   ;;  %vm466_vm0 = vcmask (!%p309_p10), 31744   ;;  %vm479_vm1 = vcmask (!%p309_p10), 1043456   ;;  %v383_v15 = vld [vmem:[%s3101_s4 + $0x8] sm:$0xff] (!%p309_p10) }
   0xf   : > { %312 = sbr.rel (%p309_p10) target bundleno = 1234 (0x4d2), region = 52  ;;  %681 = vmatprep.mubr.f32.mxu1 (!%p309_p10), %v2424_v2  ;;  %2228 = vmatprep.mubr.msk.f32.mxu0 (!%p309_p10), %vm466_vm0, %v382_v1  ;;  %v384_v16 = vld [vmem:[%s3101_s4 + $0x10] sm:$0xff] (!%p309_p10)  ;;  %v2425_v17 = vmov (!%p309_p10), 1.0|1.0   ;;  %v385_v18 = vld [vmem:[%s3101_s4 + $0x18] sm:$0xff] (!%p309_p10)  ;;  %vm613_vm12 = vcmask (!%p309_p10), 130048  }
  0x10   : > { %v2536_v3 = vshrl.u32 (!%p309_p10), %v568_v0, 7  ;;  %v386_v20 = vld [vmem:[%s3102_s5] sm:$0xff] (!%p309_p10)  ;;  %v388_v21 = vld [vmem:[%s3102_s5 + $0x10] sm:$0xff] (!%p309_p10)  ;;  %v2426_v22 = vmov (!%p309_p10), 0   ;;  %v387_v23 = vld [vmem:[%s3102_s5 + $0x8] sm:$0xff] (!%p309_p10)  ;;  %s354_s16 = sand.u32 (!%p309_p10), 1, %s2406_s28  }
  0x11   : > { %2342 = vset.pattern.permute.xlu0 (!%p309_p10), %v2426_v22  ;;  %2343 = vset.pattern.permute.xlu1 (!%p309_p10), %v2426_v22  ;;  %v389_v24 = vld [vmem:[%s3102_s5 + $0x18] sm:$0xff] (!%p309_p10)  ;;  %v398_v25 = vld [vmem:[%s3104_s7] sm:$0xff] (!%p309_p10)  ;;  %v399_v26 = vld [vmem:[%s3104_s7 + $0x8] sm:$0xff] (!%p309_p10)  ;;  %s2111_s19 = sshll.u32 (!%p309_p10), %s354_s16, 6  ;;  %s2427_s11 = smov (!%p309_p10), [#allocation2]  }
  0x12   : > { %v578_v4 = vsub.s32 (!%p309_p10), 1, %v2536_v3  ;;  %v574_v5 = vsub.s32 (!%p309_p10), 0, %v2536_v3  ;;  %v586_v6 = vsub.s32 (!%p309_p10), 3, %v2536_v3  ;;  %v2548_v7 = vadd.s32 (!%p309_p10), 8, %v2536_v3  ;;  %448 = vperm.xlu0 (!%p309_p10), %2342, %v386_v20   ;;  %458 = vperm.xlu1 (!%p309_p10), %2343, %v388_v21   ;;  %v400_v27 = vld [vmem:[%s3104_s7 + $0x10] sm:$0xff] (!%p309_p10)  ;;  %v401_v28 = vld [vmem:[%s3104_s7 + $0x18] sm:$0xff] (!%p309_p10) }
  0x13   : > { %v582_v8 = vsub.s32 (!%p309_p10), 2, %v2536_v3  ;;  %v402_v29 = vld [vmem:[%s3104_s7 + $0x20] sm:$0xff] (!%p309_p10)  ;;  %v403_v30 = vld [vmem:[%s3104_s7 + $0x28] sm:$0xff] (!%p309_p10)  ;;  %v404_v31 = vld [vmem:[%s3104_s7 + $0x30] sm:$0xff] (!%p309_p10)  ;;  %s3002_s20 = scalar_lea.vmem (!%p309_p10), [#allocation2], %s2111_s19  ;;  %s2348_s12 = sshll.u32 (!%p309_p10), %s2427_s11, 4  ;;  %s2349_s12 = int_to_ptr.vmem [resolvable:$false] %s2348_s12 }
  0x14   : > { %v405_v32 = vld [vmem:[%s3104_s7 + $0x38] sm:$0xff] (!%p309_p10)  ;;  %v2642_v39 = vld [vmem:[%s3100_s3] sm:$0xff] (!%p309_p10)  ;;  %v2652_v42 = vld [vmem:[%s3100_s3 + $0x8] sm:$0xff] (!%p309_p10) }
  0x15   : > { %v2665_v43 = vld [vmem:[%s3100_s3 + $0x10] sm:$0xff] (!%p309_p10)  ;;  %v2676_v44 = vld [vmem:[%s3100_s3 + $0x18] sm:$0xff] (!%p309_p10) }
  0x16   : > { %s358_s21 = scalar_select %p357_p11, %s2414_s30, 1  ;;  %453 = vperm.xlu0 %2342, %v387_v23   ;;  %463 = vperm.xlu1 %2343, %v389_v24  }
  0x18   : > { %s2219_s22 = sshll.u32 %s358_s21, 3  ;;  %s2112_s26 = sshll.u32 %s358_s21, 2 }
  0x19   : > { %s2545_s25 = scalar_lea.vmem %s3099_s2, %s2219_s22  ;;  %s363_s14 = scalar_lea.vmem %s3097_s0, %s2112_s26 }
  0x1a   : > { %v571_v9 = vld [vmem:[%s2545_s25] ss:$2 sm:$0xf]  ;;  %s367_s24 = scalar_lea.vmem %s3098_s1, %s2112_s26  ;;  %408 = vperm.xlu0 %2342, %v398_v25   ;;  %413 = vperm.xlu1 %2343, %v399_v26   ;;  %v2167_v60 = vld [vmem:[%s2545_s25 + $0x1] ss:$2 sm:$0xf] }
  0x1b   : > { %v579_v10 = vrot.slane %v571_v9, %v578_v4  ;;  %v575_v11 = vrot.slane %v571_v9, %v574_v5  ;;  %v587_v12 = vrot.slane %v571_v9, %v586_v6  ;;  %v583_v13 = vrot.slane %v571_v9, %v582_v8  ;;  %v377_v14 = vld [vmem:[%s363_s14] sm:$0xf]  ;;  %s2220_s21 = sshll.u32 %s2414_s30, 10  ;;  %s1995_s22 = sshll.u32 %s3002_s20, 4  ;;  %s3046_s22 = int_to_ptr.vmem [resolvable:$true] %s1995_s22 }
  0x1c   : > { %2226 = vmatprep.subr.msk.mxu0 %vm479_vm1, %v377_v14  ;;  %v2589_v19 = vld [vmem:[%s367_s24] sm:$0xf]  ;;  %v1301_v22 = vrot.slane %v2167_v60, %v578_v4  ;;  %s3044_s26 = scalar_lea.hbm %s3105_s8, %s2220_s21  ;;  %s3051_s25 = scalar_lea.sflag [#allocation3], %s354_s16 }
  0x1d   : > { %vm589_vm2 = vcmp.eq.s32.totalorder %v2536_v3, %v579_v10  ;;  %vm593_vm3 = vcmp.eq.s32.totalorder %v2548_v7, %v579_v10  ;;  %vm588_vm4 = vcmp.eq.s32.totalorder %v2536_v3, %v575_v11  ;;  %vm592_vm5 = vcmp.eq.s32.totalorder %v2548_v7, %v575_v11  ;;  %2227 = vmatpush3.msk.msra.mxu0 %vm479_vm1, %v377_v14  ;;  %s2344_s30 = scalar_lea.vmem %s3046_s22, 1024  ;;  %s2350_s14 = scalar_lea.vmem %s2349_s12, 2048 }
  0x1e   : > { %vm2234_vm6 = vmpackc.low %vm593_vm3, %vm589_vm2  ;;  %vm591_vm7 = vcmp.eq.s32.totalorder %v2536_v3, %v587_v12  ;;  %vm595_vm8 = vcmp.eq.s32.totalorder %v2548_v7, %v587_v12  ;;  %vm590_vm9 = vcmp.eq.s32.totalorder %v2536_v3, %v583_v13  ;;  %vm594_vm10 = vcmp.eq.s32.totalorder %v2548_v7, %v583_v13  ;;  %2229 = vmatmul.mubr.msk.f32.vlgmr.msra.gmra.mrb[0].mxu0 %vm466_vm0, %v383_v15  ;;  %p2345_p12 = scmp.ne.s32.totalorder %s3046_s22, %s2344_s30  ;;  %p2351_p1 = scmp.lt.s32.totalorder %s3046_s22, %s2349_s12 }
  0x1f   : > { %2235 = vmatprep.subr.msk.bf16.mxu1 %vm2234_vm6, %v2425_v17  ;;  %vm2236_vm11 = vmpackc.low %vm592_vm5, %vm588_vm4  ;;  %2231 = vmatprep.mubr.msk.f32.mxu0 %vm466_vm0, %v384_v16  ;;  %vm1311_vm15 = vcmp.eq.s32.totalorder %v2536_v3, %v1301_v22  ;;  %vm1315_vm2 = vcmp.eq.s32.totalorder %v2548_v7, %v1301_v22  ;;  %p2352_p2 = scmp.lt.s32.totalorder %s2350_s14, %s2344_s30 }
  0x20   : > { %2237 = vmatpush1.bf16.msk.msra.mxu1 %vm2236_vm11, %v2425_v17  ;;  %vm2238_vm13 = vmpackc.low %vm595_vm8, %vm591_vm7  ;;  %418 = vperm.xlu0 %2342, %v400_v27   ;;  %vm977_vm8 = vcmask 261120   ;;  %p2346_p13 = pnand %p2345_p12, %p2515_p4 }
  0x21   : > { %2239 = vmatprep.subr.msk.bf16.mxu1 %vm2238_vm13, %v2425_v17  ;;  %vm2240_vm14 = vmpackc.low %vm594_vm10, %vm590_vm9  ;;  %423 = vperm.xlu1 %2343, %v401_v28   ;;  %p2353_p3 = por %p2352_p2, %p2351_p1 }
  0x22   : > { %2232 = vmatmul.mubr.msk.f32.gmra.mrb[2].mxu0 %vm466_vm0, %v385_v18  ;;  %vm2258_vm4 = vmpackc.low %vm1315_vm2, %vm1311_vm15  ;;  %p2347_p0 = pneg %p2346_p13 }
  0x23   : > { %2133 = vmatmul.mubr.msk.f32.vlgmr.msra.gmra.mrb[0].mxu1 %vm613_vm12, %v2589_v19  ;;  %847 = vmatprep.mubr.f32.mxu0 %v2424_v2 }
  0x24   : > { %2241 = vmatpush1.bf16.msk.msra.mxu1 %vm2240_vm14, %v2425_v17  ;;  %752 = vmatprep.mubr.f32.mxu1 %v2424_v2  ;;  %p2354_p5 = pnand %p2353_p3, %p2347_p0 }
  0x25   : > { %428 = vperm.xlu0 %2342, %v402_v29   ;;  %433 = vperm.xlu1 %2343, %v403_v30  }
  0x27   : > { %2138 = vmatmul.mubr.msk.f32.vlgmr.msra.gmra.mrb[2].mxu1 %vm613_vm12, %v2589_v19 }
  0x28   : > { %936 = vmatprep.mubr.f32.mxu1 %v2424_v2 }
  0x29   : > { %438 = vperm.xlu0 %2342, %v404_v31   ;;  %443 = vperm.xlu1 %2343, %v405_v32  }
  0x91   : > { %v449_v45 = vpop.permute.xlu0 %448  ;;  %v459_v50 = vpop.permute.xlu1 %458 }
  0x95   : > { %v454_v49 = vpop.permute.xlu0 %453  ;;  %v464_v18 = vpop.permute.xlu1 %463 }
  0xf1   : > { %v2230_v33 = vpop.f32.mrb[0].mxu0 }
  0xf2   : > { %v549_v34 = vpop.f32.mrb[1].mxu0  ;;  %v2689_v51 = vadd.f32 %v2230_v33, %v454_v49 }
  0xf3   : > { %v2687_v47 = vadd.f32 %v549_v34, %v449_v45 }
  0xf5   : > { %v2637_v35 = vpop.f32.mrb[2].mxu0 }
  0xf6   : > { %v683_v36 = vpop.f32.mrb[0].mxu1  ;;  %v559_v37 = vpop.f32.mrb[3].mxu0  ;;  %v2705_v23 = vadd.f32 %v2637_v35, %v464_v18 }
  0xf7   : > { %v685_v38 = vpop.f32.mrb[1].mxu1  ;;  %v2698_v12 = vadd.f32 %v559_v37, %v459_v50  ;;  %v1297_v37 = vrot.slane %v2167_v60, %v574_v5  ;;  %v1309_v50 = vrot.slane %v2167_v60, %v586_v6  ;;  %v1305_v6 = vrot.slane %v2167_v60, %v582_v8  ;;  %v2747_v8 = vld [vmem:[%s3103_s6 + $0x8] sm:$0xff] }
  0xf8   : > { %2139 = vmatprep.subr.msk.mxu0 %vm479_vm1, %v685_v38  ;;  %v2794_v60 = vld [vmem:[%s3103_s6 + $0x28] sm:$0xff] }
  0xf9   : > { %2140 = vmatpush1.msk.msra.mxu0 %vm479_vm1, %v683_v36  ;;  %vm1310_vm3 = vcmp.eq.s32.totalorder %v2536_v3, %v1297_v37  ;;  %vm1314_vm5 = vcmp.eq.s32.totalorder %v2548_v7, %v1297_v37  ;;  %vm1313_vm6 = vcmp.eq.s32.totalorder %v2536_v3, %v1309_v50  ;;  %vm1317_vm7 = vcmp.eq.s32.totalorder %v2548_v7, %v1309_v50 }
  0xfa   : > { %v754_v40 = vpop.f32.mrb[2].mxu1  ;;  %2141 = vmatmul.mubr.msk.f32.vlgmr.msra.gmra.mrb[4].mxu0 %vm466_vm0, %v2642_v39  ;;  %vm2260_vm9 = vmpackc.low %vm1314_vm5, %vm1310_vm3  ;;  %vm1312_vm11 = vcmp.eq.s32.totalorder %v2536_v3, %v1305_v6  ;;  %vm1316_vm13 = vcmp.eq.s32.totalorder %v2548_v7, %v1305_v6  ;;  %v2760_v3 = vld [vmem:[%s3103_s6 + $0x10] sm:$0xff]  ;;  %v2772_v7 = vld [vmem:[%s3103_s6 + $0x18] sm:$0xff] }
  0xfb   : > { %v756_v41 = vpop.f32.mrb[3].mxu1  ;;  %853 = vmatprep.mubr.f32.mxu0 %v2424_v2  ;;  %vm2262_vm10 = vmpackc.low %vm1317_vm7, %vm1313_vm6 }
  0xfc   : > { %2145 = vmatprep.subr.msk.mxu1 %vm479_vm1, %v756_v41  ;;  %vm2264_vm14 = vmpackc.low %vm1316_vm13, %vm1312_vm11 }
  0xfd   : > { %2146 = vmatpush1.msk.msra.mxu1 %vm479_vm1, %v754_v40 }
  0xfe   : > { %2142 = vmatmul.mubr.msk.f32.gmra.mrb[6].mxu0 %vm466_vm0, %v2652_v42  ;;  %2147 = vmatmul.mubr.msk.f32.vlgmr.msra.gmra.mrb[4].mxu1 %vm466_vm0, %v2642_v39 }
  0xff   : > { %859 = vmatprep.mubr.f32.mxu0 %v2424_v2  ;;  %942 = vmatprep.mubr.f32.mxu1 %v2424_v2 }
 0x102   : > { %2143 = vmatmul.mubr.msk.f32.gmra.mrb[8].mxu0 %vm466_vm0, %v2665_v43  ;;  %2148 = vmatmul.mubr.msk.f32.gmra.mrb[6].mxu1 %vm466_vm0, %v2652_v42 }
 0x103   : > { %865 = vmatprep.mubr.f32.mxu0 %v2424_v2  ;;  %948 = vmatprep.mubr.f32.mxu1 %v2424_v2 }
 0x106   : > { %2144 = vmatmul.mubr.msk.f32.gmra.mrb[10].mxu0 %vm466_vm0, %v2676_v44  ;;  %2149 = vmatmul.mubr.msk.f32.gmra.mrb[8].mxu1 %vm466_vm0, %v2665_v43 }
 0x107   : > { %954 = vmatprep.mubr.f32.mxu1 %v2424_v2  ;;  %1066 = vmatprep.mubr.f32.mxu0 %v2424_v2 }
 0x10a   : > { %2150 = vmatmul.mubr.msk.f32.gmra.mrb[10].mxu1 %vm466_vm0, %v2676_v44 }
 0x10b   : > { %1179 = vmatprep.mubr.f32.mxu1 %v2424_v2 }
 0x1cd   : > { %v849_v46 = vpop.f32.mrb[4].mxu0 }
 0x1ce   : > { %v851_v48 = vpop.f32.mrb[5].mxu0  ;;  %v850_v52 = vadd.f32 %v849_v46, %v2687_v47 }
 0x1cf   : > { %v852_v53 = vadd.f32 %v851_v48, %v2687_v47 }
 0x1d0   : > { %v961_v61 = vmax.f32 %v850_v52, 0.0 }
 0x1d1   : > { %v855_v54 = vpop.f32.mrb[6].mxu0  ;;  %v938_v55 = vpop.f32.mrb[4].mxu1  ;;  %v962_v0 = vmax.f32 %v852_v53, 0.0 }
 0x1d2   : > { %v856_v56 = vadd.f32 %v855_v54, %v2689_v51  ;;  %v857_v57 = vpop.f32.mrb[7].mxu0  ;;  %v940_v58 = vpop.f32.mrb[5].mxu1  ;;  %v939_v63 = vadd.f32 %v938_v55, %v2687_v47 }
 0x1d3   : > { %v858_v59 = vadd.f32 %v857_v57, %v2689_v51  ;;  %v941_v9 = vadd.f32 %v940_v58, %v2687_v47 }
 0x1d4   : > { %v965_v62 = vmax.f32 %v856_v56, 0.0  ;;  %v963_v24 = vmax.f32 %v939_v63, 0.0 }
 0x1d5   : > { %v966_v1 = vmax.f32 %v858_v59, 0.0  ;;  %v861_v10 = vpop.f32.mrb[8].mxu0  ;;  %v944_v11 = vpop.f32.mrb[6].mxu1  ;;  %v964_v27 = vmax.f32 %v941_v9, 0.0 }
 0x1d6   : > { %v2244_v13 = vpack.c.bf16 %v965_v62, %v961_v61  ;;  %v945_v14 = vadd.f32 %v944_v11, %v2689_v51  ;;  %v863_v15 = vpop.f32.mrb[9].mxu0  ;;  %v946_v16 = vpop.f32.mrb[7].mxu1  ;;  %v862_v25 = vadd.f32 %v861_v10, %v2698_v12  ;;  %v2734_v62 = vld [vmem:[%s3103_s6] sm:$0xff] }
 0x1d7   : > { %v2242_v20 = vpack.c.bf16 %v966_v1, %v962_v0  ;;  %v947_v21 = vadd.f32 %v946_v16, %v2689_v51  ;;  %v864_v28 = vadd.f32 %v863_v15, %v2698_v12  ;;  %v2805_v0 = vld [vmem:[%s3103_s6 + $0x30] sm:$0xff]  ;;  %v2816_v1 = vld [vmem:[%s3103_s6 + $0x38] sm:$0xff]  ;;  %v2833_v9 = vpop.permute.xlu0 %408  ;;  %v2837_v15 = vpop.permute.xlu1 %413 }
 0x1d8   : > { %v967_v26 = vmax.f32 %v945_v14, 0.0  ;;  %v969_v38 = vmax.f32 %v862_v25, 0.0 }
 0x1d9   : > { %v968_v29 = vmax.f32 %v947_v21, 0.0  ;;  %v867_v30 = vpop.f32.mrb[10].mxu0  ;;  %v950_v31 = vpop.f32.mrb[8].mxu1  ;;  %2243 = vmatprep.subr.bf16.mxu0 %v2242_v20  ;;  %v970_v45 = vmax.f32 %v864_v28, 0.0 }
 0x1da   : > { %v2252_v32 = vpack.c.bf16 %v967_v26, %v963_v24  ;;  %v868_v33 = vadd.f32 %v867_v30, %v2705_v23  ;;  %v869_v34 = vpop.f32.mrb[11].mxu0  ;;  %v952_v36 = vpop.f32.mrb[9].mxu1  ;;  %2245 = vmatpush1.bf16.msra.mxu0 %v2244_v13  ;;  %v951_v41 = vadd.f32 %v950_v31, %v2698_v12 }
 0x1db   : > { %v2250_v4 = vpack.c.bf16 %v968_v29, %v964_v27  ;;  %v870_v35 = vadd.f32 %v869_v34, %v2705_v23  ;;  %v953_v48 = vadd.f32 %v952_v36, %v2698_v12  ;;  %v2843_v29 = vpop.permute.xlu0 %418 }
 0x1dc   : > { %v973_v40 = vmax.f32 %v868_v33, 0.0  ;;  %v971_v56 = vmax.f32 %v951_v41, 0.0 }
 0x1dd   : > { %v974_v46 = vmax.f32 %v870_v35, 0.0  ;;  %v956_v49 = vpop.f32.mrb[10].mxu1  ;;  %2251 = vmatprep.subr.bf16.mxu1 %v2250_v4  ;;  %v972_v58 = vmax.f32 %v953_v48, 0.0 }
 0x1de   : > { %v2248_v52 = vpack.c.bf16 %v973_v40, %v969_v38  ;;  %v957_v53 = vadd.f32 %v956_v49, %v2705_v23  ;;  %v958_v54 = vpop.f32.mrb[11].mxu1  ;;  %2253 = vmatpush1.bf16.msra.mxu1 %v2252_v32  ;;  %v2849_v49 = vpop.permute.xlu1 %423 }
 0x1df   : > { %v2246_v5 = vpack.c.bf16 %v974_v46, %v970_v45  ;;  %v959_v55 = vadd.f32 %v958_v54, %v2705_v23 }
 0x1e0   : > { %v975_v57 = vmax.f32 %v957_v53, 0.0 }
 0x1e1   : > { %v976_v59 = vmax.f32 %v959_v55, 0.0  ;;  %2247 = vmatprep.subr.bf16.mxu0 %v2246_v5 }
 0x1e2   : > { %v2256_v61 = vpack.c.bf16 %v975_v57, %v971_v56  ;;  %2249 = vmatpush1.bf16.msra.mxu0 %v2248_v52 }
 0x1e3   : > { %v2254_v63 = vpack.c.bf16 %v976_v59, %v972_v58  ;;  %2259 = vmatprep.subr.msk.bf16.mxu0 %vm2258_vm4, %v2425_v17 }
 0x1e5   : > { %2151 = vmatmul.mubr.msk.f32.vlgmr.msra.gmra.mrb[12].mxu0 %vm977_vm8, %v2734_v62  ;;  %2255 = vmatprep.subr.bf16.mxu1 %v2254_v63 }
 0x1e6   : > { %2257 = vmatpush1.bf16.msra.mxu1 %v2256_v61  ;;  %1072 = vmatprep.mubr.f32.mxu0 %v2424_v2 }
 0x1e7   : > { %2261 = vmatpush1.bf16.msk.msra.mxu0 %vm2260_vm9, %v2425_v17  ;;  %2263 = vmatprep.subr.msk.bf16.mxu1 %vm2262_vm10, %v2425_v17 }
 0x1e9   : > { %2152 = vmatmul.mubr.msk.f32.gmra.mrb[14].mxu0 %vm977_vm8, %v2747_v8  ;;  %2159 = vmatmul.mubr.msk.f32.vlgmr.msra.gmra.mrb[12].mxu1 %vm977_vm8, %v2734_v62 }
 0x1ea   : > { %1078 = vmatprep.mubr.f32.mxu0 %v2424_v2  ;;  %1185 = vmatprep.mubr.f32.mxu1 %v2424_v2 }
 0x1eb   : > { %2265 = vmatpush1.bf16.msk.msra.mxu1 %vm2264_vm14, %v2425_v17  ;;  %v2783_v17 = vld [vmem:[%s3103_s6 + $0x20] sm:$0xff] }
 0x1ed   : > { %2153 = vmatmul.mubr.msk.f32.gmra.mrb[16].mxu0 %vm977_vm8, %v2760_v3  ;;  %2160 = vmatmul.mubr.msk.f32.gmra.mrb[14].mxu1 %vm977_vm8, %v2747_v8 }
 0x1ee   : > { %1084 = vmatprep.mubr.f32.mxu0 %v2424_v2  ;;  %1191 = vmatprep.mubr.f32.mxu1 %v2424_v2 }
 0x1f1   : > { %2154 = vmatmul.mubr.msk.f32.gmra.mrb[18].mxu0 %vm977_vm8, %v2772_v7  ;;  %2161 = vmatmul.mubr.msk.f32.gmra.mrb[16].mxu1 %vm977_vm8, %v2760_v3 }
 0x1f2   : > { %1090 = vmatprep.mubr.f32.mxu0 %v2424_v2  ;;  %1197 = vmatprep.mubr.f32.mxu1 %v2424_v2 }
 0x1f5   : > { %2155 = vmatmul.mubr.msk.f32.gmra.mrb[20].mxu0 %vm977_vm8, %v2783_v17  ;;  %2162 = vmatmul.mubr.msk.f32.gmra.mrb[18].mxu1 %vm977_vm8, %v2772_v7 }
 0x1f6   : > { %1096 = vmatprep.mubr.f32.mxu0 %v2424_v2  ;;  %1203 = vmatprep.mubr.f32.mxu1 %v2424_v2 }
 0x1f9   : > { %2156 = vmatmul.mubr.msk.f32.gmra.mrb[22].mxu0 %vm977_vm8, %v2794_v60  ;;  %2163 = vmatmul.mubr.msk.f32.gmra.mrb[20].mxu1 %vm977_vm8, %v2783_v17 }
 0x1fa   : > { %1102 = vmatprep.mubr.f32.mxu0 %v2424_v2  ;;  %1209 = vmatprep.mubr.f32.mxu1 %v2424_v2 }
 0x1fd   : > { %2157 = vmatmul.mubr.msk.f32.gmra.mrb[24].mxu0 %vm977_vm8, %v2805_v0  ;;  %2164 = vmatmul.mubr.msk.f32.gmra.mrb[22].mxu1 %vm977_vm8, %v2794_v60 }
 0x1fe   : > { %1108 = vmatprep.mubr.f32.mxu0 %v2424_v2  ;;  %1215 = vmatprep.mubr.f32.mxu1 %v2424_v2 }
 0x201   : > { %2158 = vmatmul.mubr.msk.f32.gmra.mrb[26].mxu0 %vm977_vm8, %v2816_v1  ;;  %2165 = vmatmul.mubr.msk.f32.gmra.mrb[24].mxu1 %vm977_vm8, %v2805_v0 }
 0x202   : > { %1221 = vmatprep.mubr.f32.mxu1 %v2424_v2  ;;  %1398 = vmatprep.mubr.f32.mxu0 %v2424_v2 }
 0x205   : > { %2166 = vmatmul.mubr.msk.f32.gmra.mrb[26].mxu1 %vm977_vm8, %v2816_v1  ;;  %2180 = vmatmul.mubr.msk.f32.vlgmr.msra.gmra.mrb[28].mxu0 %vm613_vm12, %v2589_v19 }
 0x206   : > { %1469 = vmatprep.mubr.f32.mxu1 %v2424_v2  ;;  %1552 = vmatprep.mubr.f32.mxu0 %v2424_v2 }
 0x209   : > { %2185 = vmatmul.mubr.msk.f32.vlgmr.msra.gmra.mrb[28].mxu1 %vm613_vm12, %v2589_v19 }
 0x20a   : > { %1641 = vmatprep.mubr.f32.mxu1 %v2424_v2 }
 0x2b8   : > { %v1068_v10 = vpop.f32.mrb[12].mxu0 }
 0x2b9   : > { %v1069_v11 = vadd.f32 %v1068_v10, %v2833_v9  ;;  %v1070_v13 = vpop.f32.mrb[13].mxu0 }
 0x2ba   : > { %v1071_v14 = vadd.f32 %v1070_v13, %v2833_v9 }
 0x2bb   : > { %v1228_v16 = vmax.f32 %v1069_v11, 0.0 }
 0x2bc   : > { %v1229_v18 = vmax.f32 %v1071_v14, 0.0  ;;  %v1074_v20 = vpop.f32.mrb[14].mxu0  ;;  %v1181_v21 = vpop.f32.mrb[12].mxu1 }
 0x2bd   : > { %v1260_v22 = vmax.f32 %v1228_v16, 0.0  ;;  %v1075_v24 = vadd.f32 %v1074_v20, %v2837_v15  ;;  %v1182_v19 = vadd.f32 %v1181_v21, %v2833_v9  ;;  %v1076_v25 = vpop.f32.mrb[15].mxu0  ;;  %v1183_v26 = vpop.f32.mrb[13].mxu1 }
 0x2be   : > { %v1077_v27 = vadd.f32 %v1076_v25, %v2837_v15  ;;  %v1184_v28 = vadd.f32 %v1183_v26, %v2833_v9  ;;  %v2857_v14 = vpop.permute.xlu0 %428 }
 0x2bf   : > { %v1268_v30 = vmax.f32 %v1260_v22, %v1229_v18  ;;  %v1232_v31 = vmax.f32 %v1075_v24, 0.0  ;;  %v1230_v32 = vmax.f32 %v1182_v19, 0.0 }
 0x2c0   : > { %v1233_v33 = vmax.f32 %v1077_v27, 0.0  ;;  %v1231_v34 = vmax.f32 %v1184_v28, 0.0  ;;  %v1080_v36 = vpop.f32.mrb[16].mxu0  ;;  %v1187_v4 = vpop.f32.mrb[14].mxu1 }
 0x2c1   : > { %v1261_v35 = vmax.f32 %v1232_v31, 0.0  ;;  %v1276_v37 = vmax.f32 %v1268_v30, %v1230_v32  ;;  %v1081_v38 = vadd.f32 %v1080_v36, %v2843_v29  ;;  %v1188_v40 = vadd.f32 %v1187_v4, %v2837_v15  ;;  %v1082_v41 = vpop.f32.mrb[17].mxu0  ;;  %v1189_v45 = vpop.f32.mrb[15].mxu1 }
 0x2c2   : > { %v1083_v46 = vadd.f32 %v1082_v41, %v2843_v29  ;;  %v1190_v48 = vadd.f32 %v1189_v45, %v2837_v15  ;;  %v2865_v36 = vpop.permute.xlu1 %433 }
 0x2c3   : > { %v1269_v50 = vmax.f32 %v1261_v35, %v1233_v33  ;;  %v2851_v52 = vmax.f32 %v1276_v37, %v1231_v34  ;;  %v1236_v53 = vmax.f32 %v1081_v38, 0.0  ;;  %v1234_v54 = vmax.f32 %v1188_v40, 0.0 }
 0x2c4   : > { %v1237_v5 = vmax.f32 %v1083_v46, 0.0  ;;  %v1235_v55 = vmax.f32 %v1190_v48, 0.0  ;;  %v1086_v56 = vpop.f32.mrb[18].mxu0  ;;  %v1193_v57 = vpop.f32.mrb[16].mxu1 }
 0x2c5   : > { %v1262_v6 = vmax.f32 %v1236_v53, 0.0  ;;  %v1277_v58 = vmax.f32 %v1269_v50, %v1234_v54  ;;  %v1087_v59 = vadd.f32 %v1086_v56, %v2849_v49  ;;  %v1194_v61 = vadd.f32 %v1193_v57, %v2843_v29  ;;  %v1088_v63 = vpop.f32.mrb[19].mxu0  ;;  %v1195_v10 = vpop.f32.mrb[17].mxu1 }
 0x2c6   : > { %v1089_v11 = vadd.f32 %v1088_v63, %v2849_v49  ;;  %v1196_v13 = vadd.f32 %v1195_v10, %v2843_v29 }
 0x2c7   : > { %v1270_v16 = vmax.f32 %v1262_v6, %v1237_v5  ;;  %v2859_v18 = vmax.f32 %v1277_v58, %v1235_v55  ;;  %v1240_v20 = vmax.f32 %v1087_v59, 0.0  ;;  %v1238_v21 = vmax.f32 %v1194_v61, 0.0  ;;  %v2873_v6 = vpop.permute.xlu0 %438 }
 0x2c8   : > { %v1241_v22 = vmax.f32 %v1089_v11, 0.0  ;;  %v1239_v24 = vmax.f32 %v1196_v13, 0.0  ;;  %v1092_v19 = vpop.f32.mrb[20].mxu0  ;;  %v1199_v25 = vpop.f32.mrb[18].mxu1 }
 0x2c9   : > { %v1263_v26 = vmax.f32 %v1240_v20, 0.0  ;;  %v1278_v27 = vmax.f32 %v1270_v16, %v1238_v21  ;;  %v1093_v28 = vadd.f32 %v1092_v19, %v2857_v14  ;;  %v1200_v30 = vadd.f32 %v1199_v25, %v2849_v49  ;;  %v1094_v31 = vpop.f32.mrb[21].mxu0  ;;  %v1201_v32 = vpop.f32.mrb[19].mxu1 }
 0x2ca   : > { %v1095_v33 = vadd.f32 %v1094_v31, %v2857_v14  ;;  %v1202_v34 = vadd.f32 %v1201_v32, %v2849_v49 }
 0x2cb   : > { %v1271_v4 = vmax.f32 %v1263_v26, %v1241_v22  ;;  %v2867_v35 = vmax.f32 %v1278_v27, %v1239_v24  ;;  %v1244_v37 = vmax.f32 %v1093_v28, 0.0  ;;  %v1242_v38 = vmax.f32 %v1200_v30, 0.0  ;;  %v2881_v28 = vpop.permute.xlu1 %443 }
 0x2cc   : > { %v1245_v40 = vmax.f32 %v1095_v33, 0.0  ;;  %v1243_v41 = vmax.f32 %v1202_v34, 0.0  ;;  %v1098_v45 = vpop.f32.mrb[22].mxu0  ;;  %v1205_v46 = vpop.f32.mrb[20].mxu1 }
 0x2cd   : > { %v1264_v48 = vmax.f32 %v1244_v37, 0.0  ;;  %v1279_v50 = vmax.f32 %v1271_v4, %v1242_v38  ;;  %v1099_v53 = vadd.f32 %v1098_v45, %v2865_v36  ;;  %v1206_v54 = vadd.f32 %v1205_v46, %v2857_v14  ;;  %v1100_v5 = vpop.f32.mrb[23].mxu0  ;;  %v1207_v55 = vpop.f32.mrb[21].mxu1 }
 0x2ce   : > { %v1101_v56 = vadd.f32 %v1100_v5, %v2865_v36  ;;  %v1208_v57 = vadd.f32 %v1207_v55, %v2857_v14 }
 0x2cf   : > { %v1272_v58 = vmax.f32 %v1264_v48, %v1245_v40  ;;  %v2875_v59 = vmax.f32 %v1279_v50, %v1243_v41  ;;  %v1248_v61 = vmax.f32 %v1099_v53, 0.0  ;;  %v1246_v63 = vmax.f32 %v1206_v54, 0.0 }
 0x2d0   : > { %v1249_v10 = vmax.f32 %v1101_v56, 0.0  ;;  %v1247_v11 = vmax.f32 %v1208_v57, 0.0  ;;  %v1104_v13 = vpop.f32.mrb[24].mxu0  ;;  %v1211_v16 = vpop.f32.mrb[22].mxu1 }
 0x2d1   : > { %v1265_v20 = vmax.f32 %v1248_v61, 0.0  ;;  %v1280_v21 = vmax.f32 %v1272_v58, %v1246_v63  ;;  %v1105_v22 = vadd.f32 %v1104_v13, %v2873_v6  ;;  %v1212_v24 = vadd.f32 %v1211_v16, %v2865_v36  ;;  %v1106_v19 = vpop.f32.mrb[25].mxu0  ;;  %v1213_v25 = vpop.f32.mrb[23].mxu1 }
 0x2d2   : > { %v1107_v26 = vadd.f32 %v1106_v19, %v2873_v6  ;;  %v1214_v27 = vadd.f32 %v1213_v25, %v2865_v36 }
 0x2d3   : > { %v1273_v30 = vmax.f32 %v1265_v20, %v1249_v10  ;;  %v2883_v31 = vmax.f32 %v1280_v21, %v1247_v11  ;;  %v1252_v32 = vmax.f32 %v1105_v22, 0.0  ;;  %v1250_v33 = vmax.f32 %v1212_v24, 0.0 }
 0x2d4   : > { %v1253_v34 = vmax.f32 %v1107_v26, 0.0  ;;  %v1251_v4 = vmax.f32 %v1214_v27, 0.0  ;;  %v1110_v37 = vpop.f32.mrb[26].mxu0  ;;  %v1217_v38 = vpop.f32.mrb[24].mxu1 }
 0x2d5   : > { %v1266_v40 = vmax.f32 %v1252_v32, 0.0  ;;  %v1281_v41 = vmax.f32 %v1273_v30, %v1250_v33  ;;  %v1111_v45 = vadd.f32 %v1110_v37, %v2881_v28  ;;  %v1218_v46 = vadd.f32 %v1217_v38, %v2873_v6  ;;  %v1112_v48 = vpop.f32.mrb[27].mxu0  ;;  %v1219_v50 = vpop.f32.mrb[25].mxu1 }
 0x2d6   : > { %v1113_v53 = vadd.f32 %v1112_v48, %v2881_v28  ;;  %v1220_v54 = vadd.f32 %v1219_v50, %v2873_v6 }
 0x2d7   : > { %v1274_v5 = vmax.f32 %v1266_v40, %v1253_v34  ;;  %v2889_v55 = vmax.f32 %v1281_v41, %v1251_v4  ;;  %v1256_v56 = vmax.f32 %v1111_v45, 0.0  ;;  %v1254_v57 = vmax.f32 %v1218_v46, 0.0 }
 0x2d8   : > { %v1257_v58 = vmax.f32 %v1113_v53, 0.0  ;;  %v1255_v61 = vmax.f32 %v1220_v54, 0.0  ;;  %v1223_v63 = vpop.f32.mrb[26].mxu1  ;;  %v1400_v10 = vpop.f32.mrb[28].mxu0 }
 0x2d9   : > { %v1267_v11 = vmax.f32 %v1256_v56, 0.0  ;;  %v1282_v13 = vmax.f32 %v1274_v5, %v1254_v57  ;;  %v1224_v16 = vadd.f32 %v1223_v63, %v2881_v28  ;;  %v1225_v20 = vpop.f32.mrb[27].mxu1  ;;  %v1402_v21 = vpop.f32.mrb[29].mxu0 }
 0x2da   : > { %v1226_v22 = vadd.f32 %v1225_v20, %v2881_v28  ;;  %2186 = vmatprep.subr.msk.mxu0 %vm479_vm1, %v1402_v21 }
 0x2db   : > { %v1275_v24 = vmax.f32 %v1267_v11, %v1257_v58  ;;  %v2894_v19 = vmax.f32 %v1282_v13, %v1255_v61  ;;  %v1258_v25 = vmax.f32 %v1224_v16, 0.0  ;;  %2187 = vmatpush1.msk.msra.mxu0 %vm479_vm1, %v1400_v10 }
 0x2dc   : > { %v1259_v26 = vmax.f32 %v1226_v22, 0.0  ;;  %v1471_v27 = vpop.f32.mrb[28].mxu1  ;;  %2188 = vmatmul.mubr.msk.f32.vlgmr.msra.gmra.mrb[30].mxu0 %vm466_vm0, %v2642_v39 }
 0x2dd   : > { %v1283_v30 = vmax.f32 %v1275_v24, %v1258_v25  ;;  %v1473_v32 = vpop.f32.mrb[29].mxu1  ;;  %1558 = vmatprep.mubr.f32.mxu0 %v2424_v2 }
 0x2de   : > { %2192 = vmatprep.subr.msk.mxu1 %vm479_vm1, %v1473_v32 }
 0x2df   : > { %v2901_v33 = vmax.f32 %v1283_v30, %v1259_v26  ;;  %2193 = vmatpush1.msk.msra.mxu1 %vm479_vm1, %v1471_v27 }
 0x2e0   : > { %2189 = vmatmul.mubr.msk.f32.gmra.mrb[32].mxu0 %vm466_vm0, %v2652_v42  ;;  %2194 = vmatmul.mubr.msk.f32.vlgmr.msra.gmra.mrb[30].mxu1 %vm466_vm0, %v2642_v39 }
 0x2e1   : > { %1564 = vmatprep.mubr.f32.mxu0 %v2424_v2  ;;  %1647 = vmatprep.mubr.f32.mxu1 %v2424_v2 }
 0x2e4   : > { %2190 = vmatmul.mubr.msk.f32.gmra.mrb[34].mxu0 %vm466_vm0, %v2665_v43  ;;  %2195 = vmatmul.mubr.msk.f32.gmra.mrb[32].mxu1 %vm466_vm0, %v2652_v42 }
 0x2e5   : > { %1570 = vmatprep.mubr.f32.mxu0 %v2424_v2  ;;  %1653 = vmatprep.mubr.f32.mxu1 %v2424_v2 }
 0x2e8   : > { %2191 = vmatmul.mubr.msk.f32.gmra.mrb[36].mxu0 %vm466_vm0, %v2676_v44  ;;  %2196 = vmatmul.mubr.msk.f32.gmra.mrb[34].mxu1 %vm466_vm0, %v2665_v43 }
 0x2e9   : > { %1659 = vmatprep.mubr.f32.mxu1 %v2424_v2  ;;  %1746 = vmatprep.mubr.f32.mxu0 %v2424_v2 }
 0x2ec   : > { %2197 = vmatmul.mubr.msk.f32.gmra.mrb[36].mxu1 %vm466_vm0, %v2676_v44 }
 0x2ed   : > { %1859 = vmatprep.mubr.f32.mxu1 %v2424_v2 }
 0x3af   : > { %v1554_v39 = vpop.f32.mrb[30].mxu0 }
 0x3b0   : > { %v1556_v42 = vpop.f32.mrb[31].mxu0  ;;  %v1555_v34 = vadd.f32 %v1554_v39, %v2687_v47 }
 0x3b1   : > { %v1557_v4 = vadd.f32 %v1556_v42, %v2687_v47 }
 0x3b2   : > { %v1666_v46 = vmax.f32 %v1555_v34, 0.0 }
 0x3b3   : > { %v1560_v37 = vpop.f32.mrb[32].mxu0  ;;  %v1643_v38 = vpop.f32.mrb[30].mxu1  ;;  %v1667_v50 = vmax.f32 %v1557_v4, 0.0 }
 0x3b4   : > { %v1561_v40 = vadd.f32 %v1560_v37, %v2689_v51  ;;  %v1562_v43 = vpop.f32.mrb[33].mxu0  ;;  %v1645_v41 = vpop.f32.mrb[31].mxu1  ;;  %v1644_v44 = vadd.f32 %v1643_v38, %v2687_v47 }
 0x3b5   : > { %v1563_v45 = vadd.f32 %v1562_v43, %v2689_v51  ;;  %v1646_v54 = vadd.f32 %v1645_v41, %v2687_v47 }
 0x3b6   : > { %v1670_v48 = vmax.f32 %v1561_v40, 0.0  ;;  %v1668_v13 = vmax.f32 %v1644_v44, 0.0 }
 0x3b7   : > { %v1671_v53 = vmax.f32 %v1563_v45, 0.0  ;;  %v1566_v5 = vpop.f32.mrb[34].mxu0  ;;  %v1649_v56 = vpop.f32.mrb[32].mxu1  ;;  %v1669_v21 = vmax.f32 %v1646_v54, 0.0 }
 0x3b8   : > { %v2268_v57 = vpack.c.bf16 %v1670_v48, %v1666_v46  ;;  %v1650_v58 = vadd.f32 %v1649_v56, %v2689_v51  ;;  %v1568_v61 = vpop.f32.mrb[35].mxu0  ;;  %v1651_v63 = vpop.f32.mrb[33].mxu1  ;;  %v1567_v16 = vadd.f32 %v1566_v5, %v2698_v12 }
 0x3b9   : > { %v2266_v10 = vpack.c.bf16 %v1671_v53, %v1667_v50  ;;  %v1652_v11 = vadd.f32 %v1651_v63, %v2689_v51  ;;  %v1569_v22 = vadd.f32 %v1568_v61, %v2698_v12 }
 0x3ba   : > { %v1672_v20 = vmax.f32 %v1650_v58, 0.0  ;;  %v1674_v42 = vmax.f32 %v1567_v16, 0.0 }
 0x3bb   : > { %v1673_v24 = vmax.f32 %v1652_v11, 0.0  ;;  %v1572_v25 = vpop.f32.mrb[36].mxu0  ;;  %v1655_v47 = vpop.f32.mrb[34].mxu1  ;;  %2267 = vmatprep.subr.bf16.mxu0 %v2266_v10  ;;  %v1675_v37 = vmax.f32 %v1569_v22, 0.0 }
 0x3bc   : > { %v2276_v26 = vpack.c.bf16 %v1672_v20, %v1668_v13  ;;  %v1573_v27 = vadd.f32 %v1572_v25, %v2705_v23  ;;  %v1574_v30 = vpop.f32.mrb[37].mxu0  ;;  %v1657_v32 = vpop.f32.mrb[35].mxu1  ;;  %2269 = vmatpush1.bf16.msra.mxu0 %v2268_v57  ;;  %v1656_v4 = vadd.f32 %v1655_v47, %v2698_v12 }
 0x3bd   : > { %v2274_v39 = vpack.c.bf16 %v1673_v24, %v1669_v21  ;;  %v1575_v51 = vadd.f32 %v1574_v30, %v2705_v23  ;;  %v1658_v40 = vadd.f32 %v1657_v32, %v2698_v12 }
 0x3be   : > { %v1678_v34 = vmax.f32 %v1573_v27, 0.0  ;;  %v1676_v50 = vmax.f32 %v1656_v4, 0.0 }
 0x3bf   : > { %v1679_v38 = vmax.f32 %v1575_v51, 0.0  ;;  %v1661_v43 = vpop.f32.mrb[36].mxu1  ;;  %2275 = vmatprep.subr.bf16.mxu1 %v2274_v39  ;;  %v1677_v54 = vmax.f32 %v1658_v40, 0.0 }
 0x3c0   : > { %v2272_v41 = vpack.c.bf16 %v1678_v34, %v1674_v42  ;;  %v1662_v45 = vadd.f32 %v1661_v43, %v2705_v23  ;;  %v1663_v46 = vpop.f32.mrb[37].mxu1  ;;  %2277 = vmatpush1.bf16.msra.mxu1 %v2276_v26 }
 0x3c1   : > { %v2270_v48 = vpack.c.bf16 %v1679_v38, %v1675_v37  ;;  %v1664_v44 = vadd.f32 %v1663_v46, %v2705_v23 }
 0x3c2   : > { %v1680_v53 = vmax.f32 %v1662_v45, 0.0 }
 0x3c3   : > { %v1681_v5 = vmax.f32 %v1664_v44, 0.0  ;;  %2271 = vmatprep.subr.bf16.mxu0 %v2270_v48 }
 0x3c4   : > { %v2280_v56 = vpack.c.bf16 %v1680_v53, %v1676_v50  ;;  %2273 = vmatpush1.bf16.msra.mxu0 %v2272_v41 }
 0x3c5   : > { %v2278_v57 = vpack.c.bf16 %v1681_v5, %v1677_v54 }
 0x3c7   : > { %2198 = vmatmul.mubr.msk.f32.vlgmr.msra.gmra.mrb[38].mxu0 %vm977_vm8, %v2734_v62  ;;  %2279 = vmatprep.subr.bf16.mxu1 %v2278_v57 }
 0x3c8   : > { %2281 = vmatpush1.bf16.msra.mxu1 %v2280_v56  ;;  %1752 = vmatprep.mubr.f32.mxu0 %v2424_v2 }
 0x3cb   : > { %2199 = vmatmul.mubr.msk.f32.gmra.mrb[40].mxu0 %vm977_vm8, %v2747_v8  ;;  %2206 = vmatmul.mubr.msk.f32.vlgmr.msra.gmra.mrb[38].mxu1 %vm977_vm8, %v2734_v62 }
 0x3cc   : > { %1758 = vmatprep.mubr.f32.mxu0 %v2424_v2  ;;  %1865 = vmatprep.mubr.f32.mxu1 %v2424_v2 }
 0x3cf   : > { %2200 = vmatmul.mubr.msk.f32.gmra.mrb[42].mxu0 %vm977_vm8, %v2760_v3  ;;  %2207 = vmatmul.mubr.msk.f32.gmra.mrb[40].mxu1 %vm977_vm8, %v2747_v8 }
 0x3d0   : > { %1764 = vmatprep.mubr.f32.mxu0 %v2424_v2  ;;  %1871 = vmatprep.mubr.f32.mxu1 %v2424_v2 }
 0x3d3   : > { %2201 = vmatmul.mubr.msk.f32.gmra.mrb[44].mxu0 %vm977_vm8, %v2772_v7  ;;  %2208 = vmatmul.mubr.msk.f32.gmra.mrb[42].mxu1 %vm977_vm8, %v2760_v3 }
 0x3d4   : > { %1770 = vmatprep.mubr.f32.mxu0 %v2424_v2  ;;  %1877 = vmatprep.mubr.f32.mxu1 %v2424_v2 }
 0x3d7   : > { %2202 = vmatmul.mubr.msk.f32.gmra.mrb[46].mxu0 %vm977_vm8, %v2783_v17  ;;  %2209 = vmatmul.mubr.msk.f32.gmra.mrb[44].mxu1 %vm977_vm8, %v2772_v7 }
 0x3d8   : > { %1776 = vmatprep.mubr.f32.mxu0 %v2424_v2  ;;  %1883 = vmatprep.mubr.f32.mxu1 %v2424_v2 }
 0x3db   : > { %2203 = vmatmul.mubr.msk.f32.gmra.mrb[48].mxu0 %vm977_vm8, %v2794_v60  ;;  %2210 = vmatmul.mubr.msk.f32.gmra.mrb[46].mxu1 %vm977_vm8, %v2783_v17 }
 0x3dc   : > { %1782 = vmatprep.mubr.f32.mxu0 %v2424_v2  ;;  %1889 = vmatprep.mubr.f32.mxu1 %v2424_v2 }
 0x3df   : > { %2204 = vmatmul.mubr.msk.f32.gmra.mrb[50].mxu0 %vm977_vm8, %v2805_v0  ;;  %2211 = vmatmul.mubr.msk.f32.gmra.mrb[48].mxu1 %vm977_vm8, %v2794_v60 }
 0x3e0   : > { %1788 = vmatprep.mubr.f32.mxu0 %v2424_v2  ;;  %1895 = vmatprep.mubr.f32.mxu1 %v2424_v2 }
 0x3e3   : > { %2205 = vmatmul.mubr.msk.f32.gmra.mrb[52].mxu0 %vm977_vm8, %v2816_v1  ;;  %2212 = vmatmul.mubr.msk.f32.gmra.mrb[50].mxu1 %vm977_vm8, %v2805_v0 }
 0x3e4   : > { %1901 = vmatprep.mubr.f32.mxu1 %v2424_v2 }
 0x3e7   : > { %2213 = vmatmul.mubr.msk.f32.gmra.mrb[52].mxu1 %vm977_vm8, %v2816_v1 }
 0x49a   : > { %v1748_v12 = vpop.f32.mrb[38].mxu0 }
 0x49b   : > { %v1749_v23 = vadd.f32 %v1748_v12, %v2833_v9  ;;  %v1750_v62 = vpop.f32.mrb[39].mxu0 }
 0x49c   : > { %v1751_v8 = vadd.f32 %v1750_v62, %v2833_v9 }
 0x49d   : > { %v1908_v3 = vmax.f32 %v1749_v23, 0.0 }
 0x49e   : > { %v1909_v7 = vmax.f32 %v1751_v8, 0.0  ;;  %v1754_v17 = vpop.f32.mrb[40].mxu0  ;;  %v1861_v60 = vpop.f32.mrb[38].mxu1 }
 0x49f   : > { %v1940_v58 = vmax.f32 %v2851_v52, %v1908_v3  ;;  %v1755_v0 = vadd.f32 %v1754_v17, %v2837_v15  ;;  %v1862_v2 = vadd.f32 %v1861_v60, %v2833_v9  ;;  %v1756_v61 = vpop.f32.mrb[41].mxu0  ;;  %v1863_v1 = vpop.f32.mrb[39].mxu1 }
 0x4a0   : > { %v1757_v63 = vadd.f32 %v1756_v61, %v2837_v15  ;;  %v1864_v10 = vadd.f32 %v1863_v1, %v2833_v9 }
 0x4a1   : > { %v1948_v11 = vmax.f32 %v1940_v58, %v1909_v7  ;;  %v1912_v13 = vmax.f32 %v1755_v0, 0.0  ;;  %v1910_v16 = vmax.f32 %v1862_v2, 0.0 }
 0x4a2   : > { %v1913_v20 = vmax.f32 %v1757_v63, 0.0  ;;  %v1911_v21 = vmax.f32 %v1864_v10, 0.0  ;;  %v1760_v22 = vpop.f32.mrb[42].mxu0  ;;  %v1867_v24 = vpop.f32.mrb[40].mxu1 }
 0x4a3   : > { %v1941_v52 = vmax.f32 %v2859_v18, %v1912_v13  ;;  %v1956_v25 = vmax.f32 %v1948_v11, %v1910_v16  ;;  %v1761_v47 = vadd.f32 %v1760_v22, %v2843_v29  ;;  %v1868_v26 = vadd.f32 %v1867_v24, %v2837_v15  ;;  %v1762_v27 = vpop.f32.mrb[43].mxu0  ;;  %v1869_v30 = vpop.f32.mrb[41].mxu1 }
 0x4a4   : > { %v1763_v9 = vadd.f32 %v1762_v27, %v2843_v29  ;;  %v1870_v32 = vadd.f32 %v1869_v30, %v2837_v15 }
 0x4a5   : > { %v1949_v39 = vmax.f32 %v1941_v52, %v1913_v20  ;;  %v1964_v51 = vmax.f32 %v1956_v25, %v1911_v21  ;;  %v1916_v42 = vmax.f32 %v1761_v47, 0.0  ;;  %v1914_v34 = vmax.f32 %v1868_v26, 0.0 }
 0x4a6   : > { %v1917_v4 = vmax.f32 %v1763_v9, 0.0  ;;  %v1915_v37 = vmax.f32 %v1870_v32, 0.0  ;;  %v1766_v38 = vpop.f32.mrb[44].mxu0  ;;  %v1873_v40 = vpop.f32.mrb[42].mxu1 }
 0x4a7   : > { %1972 = vst [vmem:[%s3002_s20] sm:$0xff] %v1964_v51  ;;  %v1942_v18 = vmax.f32 %v2867_v35, %v1916_v42  ;;  %v1957_v43 = vmax.f32 %v1949_v39, %v1914_v34  ;;  %v1767_v41 = vadd.f32 %v1766_v38, %v2849_v49  ;;  %v1874_v15 = vadd.f32 %v1873_v40, %v2843_v29  ;;  %v1768_v45 = vpop.f32.mrb[45].mxu0  ;;  %v1875_v46 = vpop.f32.mrb[43].mxu1 }
 0x4a8   : > { %v1769_v48 = vadd.f32 %v1768_v45, %v2849_v49  ;;  %v1876_v44 = vadd.f32 %v1875_v46, %v2843_v29 }
 0x4a9   : > { %v1950_v50 = vmax.f32 %v1942_v18, %v1917_v4  ;;  %v1965_v53 = vmax.f32 %v1957_v43, %v1915_v37  ;;  %v1920_v54 = vmax.f32 %v1767_v41, 0.0  ;;  %v1918_v5 = vmax.f32 %v1874_v15, 0.0 }
 0x4aa   : > { %v1921_v56 = vmax.f32 %v1769_v48, 0.0  ;;  %v1919_v57 = vmax.f32 %v1876_v44, 0.0  ;;  %v1772_v12 = vpop.f32.mrb[46].mxu0  ;;  %v1879_v35 = vpop.f32.mrb[44].mxu1 }
 0x4ab   : > { %1973 = vst [vmem:[%s3002_s20 + $0x8] sm:$0xff] %v1965_v53  ;;  %v1943_v23 = vmax.f32 %v2875_v59, %v1920_v54  ;;  %v1958_v62 = vmax.f32 %v1950_v50, %v1918_v5  ;;  %v1773_v8 = vadd.f32 %v1772_v12, %v2857_v14  ;;  %v1880_v3 = vadd.f32 %v1879_v35, %v2849_v49  ;;  %v1774_v7 = vpop.f32.mrb[47].mxu0  ;;  %v1881_v17 = vpop.f32.mrb[45].mxu1 }
 0x4ac   : > { %v1775_v29 = vadd.f32 %v1774_v7, %v2857_v14  ;;  %v1882_v60 = vadd.f32 %v1881_v17, %v2849_v49 }
 0x4ad   : > { %v1951_v58 = vmax.f32 %v1943_v23, %v1921_v56  ;;  %v1966_v0 = vmax.f32 %v1958_v62, %v1919_v57  ;;  %v1924_v2 = vmax.f32 %v1773_v8, 0.0  ;;  %v1922_v61 = vmax.f32 %v1880_v3, 0.0 }
 0x4ae   : > { %v1925_v1 = vmax.f32 %v1775_v29, 0.0  ;;  %v1923_v63 = vmax.f32 %v1882_v60, 0.0  ;;  %v1778_v10 = vpop.f32.mrb[48].mxu0  ;;  %v1885_v59 = vpop.f32.mrb[46].mxu1 }
 0x4af   : > { %1974 = vst [vmem:[%s3002_s20 + $0x10] sm:$0xff] %v1966_v0  ;;  %v1944_v11 = vmax.f32 %v2883_v31, %v1924_v2  ;;  %v1959_v13 = vmax.f32 %v1951_v58, %v1922_v61  ;;  %v1779_v16 = vadd.f32 %v1778_v10, %v2865_v36  ;;  %v1886_v20 = vadd.f32 %v1885_v59, %v2857_v14  ;;  %v1780_v21 = vpop.f32.mrb[49].mxu0  ;;  %v1887_v22 = vpop.f32.mrb[47].mxu1 }
 0x4b0   : > { %v1781_v49 = vadd.f32 %v1780_v21, %v2865_v36  ;;  %v1888_v24 = vadd.f32 %v1887_v22, %v2857_v14 }
 0x4b1   : > { %v1952_v52 = vmax.f32 %v1944_v11, %v1925_v1  ;;  %v1967_v25 = vmax.f32 %v1959_v13, %v1923_v63  ;;  %v1928_v47 = vmax.f32 %v1779_v16, 0.0  ;;  %v1926_v26 = vmax.f32 %v1886_v20, 0.0 }
 0x4b2   : > { %v1929_v27 = vmax.f32 %v1781_v49, 0.0  ;;  %v1927_v30 = vmax.f32 %v1888_v24, 0.0  ;;  %v1784_v9 = vpop.f32.mrb[50].mxu0  ;;  %v1891_v31 = vpop.f32.mrb[48].mxu1 }
 0x4b3   : > { %1975 = vst [vmem:[%s3002_s20 + $0x18] sm:$0xff] %v1967_v25  ;;  %v1945_v32 = vmax.f32 %v2889_v55, %v1928_v47  ;;  %v1960_v39 = vmax.f32 %v1952_v52, %v1926_v26  ;;  %v1785_v51 = vadd.f32 %v1784_v9, %v2873_v6  ;;  %v1892_v42 = vadd.f32 %v1891_v31, %v2865_v36  ;;  %v1786_v34 = vpop.f32.mrb[51].mxu0  ;;  %v1893_v4 = vpop.f32.mrb[49].mxu1 }
 0x4b4   : > { %v1787_v14 = vadd.f32 %v1786_v34, %v2873_v6  ;;  %v1894_v37 = vadd.f32 %v1893_v4, %v2865_v36 }
 0x4b5   : > { %v1953_v38 = vmax.f32 %v1945_v32, %v1929_v27  ;;  %v1968_v40 = vmax.f32 %v1960_v39, %v1927_v30  ;;  %v1932_v18 = vmax.f32 %v1785_v51, 0.0  ;;  %v1930_v43 = vmax.f32 %v1892_v42, 0.0 }
 0x4b6   : > { %v1933_v41 = vmax.f32 %v1787_v14, 0.0  ;;  %v1931_v15 = vmax.f32 %v1894_v37, 0.0  ;;  %v1790_v45 = vpop.f32.mrb[52].mxu0  ;;  %v1897_v55 = vpop.f32.mrb[50].mxu1 }
 0x4b7   : > { %1976 = vst [vmem:[%s3002_s20 + $0x20] sm:$0xff] %v1968_v40  ;;  %v1946_v46 = vmax.f32 %v2894_v19, %v1932_v18  ;;  %v1961_v48 = vmax.f32 %v1953_v38, %v1930_v43  ;;  %v1791_v44 = vadd.f32 %v1790_v45, %v2881_v28  ;;  %v1898_v50 = vadd.f32 %v1897_v55, %v2873_v6  ;;  %v1792_v53 = vpop.f32.mrb[53].mxu0  ;;  %v1899_v54 = vpop.f32.mrb[51].mxu1 }
 0x4b8   : > { %v1793_v36 = vadd.f32 %v1792_v53, %v2881_v28  ;;  %v1900_v5 = vadd.f32 %v1899_v54, %v2873_v6 }
 0x4b9   : > { %v1954_v56 = vmax.f32 %v1946_v46, %v1933_v41  ;;  %v1969_v57 = vmax.f32 %v1961_v48, %v1931_v15  ;;  %v1936_v12 = vmax.f32 %v1791_v44, 0.0  ;;  %v1934_v35 = vmax.f32 %v1898_v50, 0.0 }
 0x4ba   : > { %v1937_v23 = vmax.f32 %v1793_v36, 0.0  ;;  %v1935_v19 = vmax.f32 %v1900_v5, 0.0  ;;  %v1903_v62 = vpop.f32.mrb[52].mxu1 }
 0x4bb   : > { %1977 = vst [vmem:[%s3002_s20 + $0x28] sm:$0xff] %v1969_v57  ;;  %v1947_v8 = vmax.f32 %v2901_v33, %v1936_v12  ;;  %v1962_v3 = vmax.f32 %v1954_v56, %v1934_v35  ;;  %v1904_v7 = vadd.f32 %v1903_v62, %v2881_v28  ;;  %v1905_v17 = vpop.f32.mrb[53].mxu1 }
 0x4bc   : > { %v1906_v6 = vadd.f32 %v1905_v17, %v2881_v28 }
 0x4bd   : > { %v1955_v29 = vmax.f32 %v1947_v8, %v1937_v23  ;;  %v1970_v60 = vmax.f32 %v1962_v3, %v1935_v19  ;;  %v1938_v58 = vmax.f32 %v1904_v7, 0.0 }
 0x4be   : > { %v1939_v0 = vmax.f32 %v1906_v6, 0.0 }
 0x4bf   : > { %1978 = vst [vmem:[%s3002_s20 + $0x30] sm:$0xff] %v1970_v60  ;;  %v1963_v2 = vmax.f32 %v1955_v29, %v1938_v58 }
 0x4c1   : > { %v1971_v28 = vmax.f32 %v1963_v2, %v1939_v0 }
 0x4c3   : > { %1979 = vst [vmem:[%s3002_s20 + $0x38] sm:$0xff] %v1971_v28 }
 0x4c4   : > { %2357 = shalt.err (!%p2354_p5)
}
 0x4c5   : > { %s2358_s16 = scalar_lea.hbm %s3044_s26, 1024  ;;  %s2362_s21 = scalar_lea.hbm %s3105_s8, 2048 }
 0x4c6   : > { %p2359_p6 = scmp.ne.s32.totalorder %s3044_s26, %s2358_s16  ;;  %p2363_p10 = scmp.lt.u32.totalorder %s3044_s26, %s3105_s8 }
 0x4c7   : > { %p2364_p11 = scmp.lt.u32.totalorder %s2362_s21, %s2358_s16  ;;  %p2366_p13 = scmp.lt.u32.totalorder %s2358_s16, %s3044_s26 }
 0x4c8   : > { %p2360_p7 = pnand %p2359_p6, %p2515_p4 }
 0x4c9   : > { %p2365_p12 = por %p2364_p11, %p2363_p10 }
 0x4ca   : > { %p2361_p9 = pneg %p2360_p7 }
 0x4cb   : > { %p2367_p0 = por %p2366_p13, %p2365_p12 }
 0x4cd   : > { %p2368_p1 = pnand %p2367_p0, %p2361_p9 }
 0x4cf   : > { %2371 = shalt.err (!%p2368_p1)
}
 0x4d0   : > { %s2428_s30 = smov 128   ;;  %s2429_s11 = smov 8  }
 0x4d1   : > { %2282 = dma.vmem_to_hbm [thread:$0]  (%p2515_p4), %s3046_s22, 1024, %s3044_s26, %s3051_s25, %s2428_s30, %s2428_s30, %s2429_s11  }
 0x4d2 PF: > { %p2288_p2 = scmp.ge.s32.totalorder %s2422_s10, 2  ;;  %s2010_s12 = sand.u32 1, %s2402_s27  }
 0x4d3   : > { %s2011_s14 = scalar_lea.sflag [#allocation3], %s2010_s12 }
 0x4d4   : > { %p2285_p3 = pnand %p2288_p2, %p2522_p8 }
 0x4d6   : > { %2397 = dma.done.wait (!%p2285_p3), %s2011_s14, 1024  }
 0x4d7   : > { %2399 = vsyncadd (!%p2285_p3), %s2011_s14, 4294966272  ;;  %s21_s10 = sadd.s32 1, %s2422_s10   ;;  %s3108_s27 = smov %s2406_s28 }
 0x4d8   : > { %p18_p5 = scmp.ge.s32.totalorder %s21_s10, 4   ;;  %s3109_s28 = smov %s2410_s29 }
 0x4d9   : > { %s3110_s29 = smov %s2528_s18  ;;  %s3111_s30 = smov %s2418_s9 }
 0x4da   : > { %s3112_s9 = smov %s3114_s13  ;;  %20 = sbr.rel (!%p18_p5) target bundleno = 4 (0x4), region = 94 }
 0x4e1   :  { %2016 = vsyncpa [#allocation3], 1 }
 0x4e2   :  { %2018 = vsyncpa [#allocation3 + $0x1], 1 }

// kernel: tpu_custom_call.1
= control target key start
LH: loop header
LB: loop body
LE: loop exit
PB: predicated region body
PF: predicated region fallthrough
CT: control target
= control target key end

     0   :  { %13 = vsyncpa [#allocation3], 0  ;;  %s3094_s0 = inlined_call_operand.vmem [shape: f32[2,4,128], index: 0, kind: input, shape index: {}]   ;;  %s3095_s1 = inlined_call_operand.vmem [shape: f32[2,4,16], index: 1, kind: input, shape index: {}]   ;;  %s3096_s2 = inlined_call_operand.vmem [shape: s32[2,1,2,512], index: 2, kind: input, shape index: {}]   ;;  %s3097_s3 = inlined_call_operand.vmem [shape: f32[32,4], index: 3, kind: input, shape index: {}]   ;;  %s3098_s4 = inlined_call_operand.vmem [shape: f32[32,4], index: 4, kind: input, shape index: {}]   ;;  %s3099_s5 = inlined_call_operand.vmem [shape: f32[32,1], index: 5, kind: input, shape index: {}]   ;;  %s3100_s6 = inlined_call_operand.vmem [shape: f32[64,32], index: 6, kind: input, shape index: {}]   ;;  %s3101_s7 = inlined_call_operand.vmem [shape: f32[64,1], index: 7, kind: input, shape index: {}]   ;;  %s3102_s8 = inlined_call_operand.hbm [shape: f32[2,64,128], index: 8, kind: output, shape index: {}]  }
   0x1   :  { %15 = vsyncpa [#allocation3 + $0x1], 0  ;;  %s2472_s27 = smov 0   ;;  %s2474_s28 = smov 0  }
   0x2   :  { %s2476_s29 = smov 0   ;;  %s2478_s30 = smov 0  }
   0x3   :  { %s2480_s9 = smov 0   ;;  %s2482_s10 = smov 0  }
   0x4 LB: > { %s2103_s11 = sadd.s32 4294967295, %s2419_s10   ;;  %s2104_s12 = sadd.s32 4294967294, %s2419_s10   ;;  %s2419_s10 = sphi %s2482_s10, %s21_s10   ;;  %s2415_s9 = sphi %s2480_s9, %s3109_s9   ;;  %s2411_s30 = sphi %s2478_s30, %s3108_s30   ;;  %s2407_s29 = sphi %s2476_s29, %s3107_s29   ;;  %s2403_s28 = sphi %s2474_s28, %s3106_s28   ;;  %s2399_s27 = sphi %s2472_s27, %s3105_s27  }
   0x5   : > { %s33_s13 = sadd.s32 1, %s2415_s9  ;;  %s229_s14 = sadd.s32 1, %s2407_s29 }
   0x6   : > { %p35_p0 = scmp.ge.s32.totalorder %s33_s13, 2  ;;  %p239_p1 = scmp.ne.s32.totalorder %s2407_s29, %s2403_s28 }
   0x7   : > { %p240_p2 = scmp.eq.s32.totalorder %s2103_s11, 1  ;;  %p245_p3 = scmp.ne.s32.totalorder %s2403_s28, %s2399_s27 }
   0x8   : > { %s3111_s13 = smov (%p35_p0, %s33_s13), 0  ;;  %p246_p5 = scmp.eq.s32.totalorder %s2104_s12, 1 }
   0x9   : > { %p2512_p4 = por %p240_p2, %p239_p1  ;;  %s224_s16 = ssub.s32 %s2415_s9, %s3111_s13 }
   0xa   : > { %p2107_p6 = scmp.ge.s32.totalorder %s2419_s10, 1  ;;  %p227_p7 = scmp.eq.s32.totalorder %s224_s16, 0 }
   0xb   : > { %p2519_p8 = por %p246_p5, %p245_p3  ;;  %p308_p9 = scmp.lt.s32.totalorder %s2419_s10, 3 }
   0xc   : > { %s2525_s18 = scalar_select %p227_p7, %s2407_s29, %s229_s14  }
   0xd   : > { %p309_p10 = pnand %p2107_p6, %p308_p9 }
   0xe   : > { %p357_p11 = scmp.lt.s32.totalorder (!%p309_p10), %s2411_s30, 1  ;;  %v568_v0 = vlaneseq (!%p309_p10)  ;;  %v382_v1 = vld [vmem:[%s3098_s4] sm:$0xff] (!%p309_p10)  ;;  %v2421_v2 = vmov (!%p309_p10), 0.0   ;;  %vm466_vm0 = vcmask (!%p309_p10), 31744   ;;  %vm479_vm1 = vcmask (!%p309_p10), 1043456   ;;  %v383_v15 = vld [vmem:[%s3098_s4 + $0x8] sm:$0xff] (!%p309_p10) }
   0xf   : > { %312 = sbr.rel (%p309_p10) target bundleno = 1234 (0x4d2), region = 52  ;;  %681 = vmatprep.mubr.f32.mxu1 (!%p309_p10), %v2421_v2  ;;  %2225 = vmatprep.mubr.msk.f32.mxu0 (!%p309_p10), %vm466_vm0, %v382_v1  ;;  %v384_v16 = vld [vmem:[%s3098_s4 + $0x10] sm:$0xff] (!%p309_p10)  ;;  %v2422_v17 = vmov (!%p309_p10), 1.0|1.0   ;;  %v385_v18 = vld [vmem:[%s3098_s4 + $0x18] sm:$0xff] (!%p309_p10)  ;;  %vm613_vm12 = vcmask (!%p309_p10), 130048  }
  0x10   : > { %v2533_v3 = vshrl.u32 (!%p309_p10), %v568_v0, 7  ;;  %v386_v20 = vld [vmem:[%s3099_s5] sm:$0xff] (!%p309_p10)  ;;  %v388_v21 = vld [vmem:[%s3099_s5 + $0x10] sm:$0xff] (!%p309_p10)  ;;  %v2423_v22 = vmov (!%p309_p10), 0   ;;  %v387_v23 = vld [vmem:[%s3099_s5 + $0x8] sm:$0xff] (!%p309_p10)  ;;  %s354_s16 = sand.u32 (!%p309_p10), 1, %s2403_s28  }
  0x11   : > { %2339 = vset.pattern.permute.xlu0 (!%p309_p10), %v2423_v22  ;;  %2340 = vset.pattern.permute.xlu1 (!%p309_p10), %v2423_v22  ;;  %v389_v24 = vld [vmem:[%s3099_s5 + $0x18] sm:$0xff] (!%p309_p10)  ;;  %v398_v25 = vld [vmem:[%s3101_s7] sm:$0xff] (!%p309_p10)  ;;  %v399_v26 = vld [vmem:[%s3101_s7 + $0x8] sm:$0xff] (!%p309_p10)  ;;  %s2108_s19 = sshll.u32 (!%p309_p10), %s354_s16, 6  ;;  %s2424_s11 = smov (!%p309_p10), [#allocation2]  }
  0x12   : > { %v578_v4 = vsub.s32 (!%p309_p10), 1, %v2533_v3  ;;  %v574_v5 = vsub.s32 (!%p309_p10), 0, %v2533_v3  ;;  %v586_v6 = vsub.s32 (!%p309_p10), 3, %v2533_v3  ;;  %v2545_v7 = vadd.s32 (!%p309_p10), 8, %v2533_v3  ;;  %448 = vperm.xlu0 (!%p309_p10), %2339, %v386_v20   ;;  %458 = vperm.xlu1 (!%p309_p10), %2340, %v388_v21   ;;  %v400_v27 = vld [vmem:[%s3101_s7 + $0x10] sm:$0xff] (!%p309_p10)  ;;  %v401_v28 = vld [vmem:[%s3101_s7 + $0x18] sm:$0xff] (!%p309_p10) }
  0x13   : > { %v582_v8 = vsub.s32 (!%p309_p10), 2, %v2533_v3  ;;  %v402_v29 = vld [vmem:[%s3101_s7 + $0x20] sm:$0xff] (!%p309_p10)  ;;  %v403_v30 = vld [vmem:[%s3101_s7 + $0x28] sm:$0xff] (!%p309_p10)  ;;  %v404_v31 = vld [vmem:[%s3101_s7 + $0x30] sm:$0xff] (!%p309_p10)  ;;  %s2999_s20 = scalar_lea.vmem (!%p309_p10), [#allocation2], %s2108_s19  ;;  %s2345_s12 = sshll.u32 (!%p309_p10), %s2424_s11, 4  ;;  %s2346_s12 = int_to_ptr.vmem [resolvable:$false] %s2345_s12 }
  0x14   : > { %v405_v32 = vld [vmem:[%s3101_s7 + $0x38] sm:$0xff] (!%p309_p10)  ;;  %v2639_v39 = vld [vmem:[%s3097_s3] sm:$0xff] (!%p309_p10)  ;;  %v2649_v42 = vld [vmem:[%s3097_s3 + $0x8] sm:$0xff] (!%p309_p10) }
  0x15   : > { %v2662_v43 = vld [vmem:[%s3097_s3 + $0x10] sm:$0xff] (!%p309_p10)  ;;  %v2673_v44 = vld [vmem:[%s3097_s3 + $0x18] sm:$0xff] (!%p309_p10) }
  0x16   : > { %s358_s21 = scalar_select %p357_p11, %s2411_s30, 1  ;;  %453 = vperm.xlu0 %2339, %v387_v23   ;;  %463 = vperm.xlu1 %2340, %v389_v24  }
  0x18   : > { %s2216_s22 = sshll.u32 %s358_s21, 3  ;;  %s2109_s26 = sshll.u32 %s358_s21, 2 }
  0x19   : > { %s2542_s25 = scalar_lea.vmem %s3096_s2, %s2216_s22  ;;  %s363_s14 = scalar_lea.vmem %s3094_s0, %s2109_s26 }
  0x1a   : > { %v571_v9 = vld [vmem:[%s2542_s25] ss:$2 sm:$0xf]  ;;  %s367_s24 = scalar_lea.vmem %s3095_s1, %s2109_s26  ;;  %408 = vperm.xlu0 %2339, %v398_v25   ;;  %413 = vperm.xlu1 %2340, %v399_v26   ;;  %v2164_v60 = vld [vmem:[%s2542_s25 + $0x1] ss:$2 sm:$0xf] }
  0x1b   : > { %v579_v10 = vrot.slane %v571_v9, %v578_v4  ;;  %v575_v11 = vrot.slane %v571_v9, %v574_v5  ;;  %v587_v12 = vrot.slane %v571_v9, %v586_v6  ;;  %v583_v13 = vrot.slane %v571_v9, %v582_v8  ;;  %v377_v14 = vld [vmem:[%s363_s14] sm:$0xf]  ;;  %s2217_s21 = sshll.u32 %s2411_s30, 10  ;;  %s1995_s22 = sshll.u32 %s2999_s20, 4  ;;  %s3043_s22 = int_to_ptr.vmem [resolvable:$true] %s1995_s22 }
  0x1c   : > { %2223 = vmatprep.subr.msk.mxu0 %vm479_vm1, %v377_v14  ;;  %v2586_v19 = vld [vmem:[%s367_s24] sm:$0xf]  ;;  %v1301_v22 = vrot.slane %v2164_v60, %v578_v4  ;;  %s3041_s26 = scalar_lea.hbm %s3102_s8, %s2217_s21  ;;  %s3048_s25 = scalar_lea.sflag [#allocation3], %s354_s16 }
  0x1d   : > { %vm589_vm2 = vcmp.eq.s32.totalorder %v2533_v3, %v579_v10  ;;  %vm593_vm3 = vcmp.eq.s32.totalorder %v2545_v7, %v579_v10  ;;  %vm588_vm4 = vcmp.eq.s32.totalorder %v2533_v3, %v575_v11  ;;  %vm592_vm5 = vcmp.eq.s32.totalorder %v2545_v7, %v575_v11  ;;  %2224 = vmatpush3.msk.msra.mxu0 %vm479_vm1, %v377_v14  ;;  %s2341_s30 = scalar_lea.vmem %s3043_s22, 1024  ;;  %s2347_s14 = scalar_lea.vmem %s2346_s12, 2048 }
  0x1e   : > { %vm2231_vm6 = vmpackc.low %vm593_vm3, %vm589_vm2  ;;  %vm591_vm7 = vcmp.eq.s32.totalorder %v2533_v3, %v587_v12  ;;  %vm595_vm8 = vcmp.eq.s32.totalorder %v2545_v7, %v587_v12  ;;  %vm590_vm9 = vcmp.eq.s32.totalorder %v2533_v3, %v583_v13  ;;  %vm594_vm10 = vcmp.eq.s32.totalorder %v2545_v7, %v583_v13  ;;  %2226 = vmatmul.mubr.msk.f32.vlgmr.msra.gmra.mrb[0].mxu0 %vm466_vm0, %v383_v15  ;;  %p2342_p12 = scmp.ne.s32.totalorder %s3043_s22, %s2341_s30  ;;  %p2348_p1 = scmp.lt.s32.totalorder %s3043_s22, %s2346_s12 }
  0x1f   : > { %2232 = vmatprep.subr.msk.bf16.mxu1 %vm2231_vm6, %v2422_v17  ;;  %vm2233_vm11 = vmpackc.low %vm592_vm5, %vm588_vm4  ;;  %2228 = vmatprep.mubr.msk.f32.mxu0 %vm466_vm0, %v384_v16  ;;  %vm1311_vm15 = vcmp.eq.s32.totalorder %v2533_v3, %v1301_v22  ;;  %vm1315_vm2 = vcmp.eq.s32.totalorder %v2545_v7, %v1301_v22  ;;  %p2349_p2 = scmp.lt.s32.totalorder %s2347_s14, %s2341_s30 }
  0x20   : > { %2234 = vmatpush1.bf16.msk.msra.mxu1 %vm2233_vm11, %v2422_v17  ;;  %vm2235_vm13 = vmpackc.low %vm595_vm8, %vm591_vm7  ;;  %418 = vperm.xlu0 %2339, %v400_v27   ;;  %vm977_vm8 = vcmask 261120   ;;  %p2343_p13 = pnand %p2342_p12, %p2512_p4 }
  0x21   : > { %2236 = vmatprep.subr.msk.bf16.mxu1 %vm2235_vm13, %v2422_v17  ;;  %vm2237_vm14 = vmpackc.low %vm594_vm10, %vm590_vm9  ;;  %423 = vperm.xlu1 %2340, %v401_v28   ;;  %p2350_p3 = por %p2349_p2, %p2348_p1 }
  0x22   : > { %2229 = vmatmul.mubr.msk.f32.gmra.mrb[2].mxu0 %vm466_vm0, %v385_v18  ;;  %vm2255_vm4 = vmpackc.low %vm1315_vm2, %vm1311_vm15  ;;  %p2344_p0 = pneg %p2343_p13 }
  0x23   : > { %2130 = vmatmul.mubr.msk.f32.vlgmr.msra.gmra.mrb[0].mxu1 %vm613_vm12, %v2586_v19  ;;  %847 = vmatprep.mubr.f32.mxu0 %v2421_v2 }
  0x24   : > { %2238 = vmatpush1.bf16.msk.msra.mxu1 %vm2237_vm14, %v2422_v17  ;;  %752 = vmatprep.mubr.f32.mxu1 %v2421_v2  ;;  %p2351_p5 = pnand %p2350_p3, %p2344_p0 }
  0x25   : > { %428 = vperm.xlu0 %2339, %v402_v29   ;;  %433 = vperm.xlu1 %2340, %v403_v30  }
  0x27   : > { %2135 = vmatmul.mubr.msk.f32.vlgmr.msra.gmra.mrb[2].mxu1 %vm613_vm12, %v2586_v19 }
  0x28   : > { %936 = vmatprep.mubr.f32.mxu1 %v2421_v2 }
  0x29   : > { %438 = vperm.xlu0 %2339, %v404_v31   ;;  %443 = vperm.xlu1 %2340, %v405_v32  }
  0x91   : > { %v449_v45 = vpop.permute.xlu0 %448  ;;  %v459_v50 = vpop.permute.xlu1 %458 }
  0x95   : > { %v454_v49 = vpop.permute.xlu0 %453  ;;  %v464_v18 = vpop.permute.xlu1 %463 }
  0xf1   : > { %v2227_v33 = vpop.f32.mrb[0].mxu0 }
  0xf2   : > { %v549_v34 = vpop.f32.mrb[1].mxu0  ;;  %v2686_v51 = vadd.f32 %v2227_v33, %v454_v49 }
  0xf3   : > { %v2684_v47 = vadd.f32 %v549_v34, %v449_v45 }
  0xf5   : > { %v2634_v35 = vpop.f32.mrb[2].mxu0 }
  0xf6   : > { %v683_v36 = vpop.f32.mrb[0].mxu1  ;;  %v559_v37 = vpop.f32.mrb[3].mxu0  ;;  %v2702_v23 = vadd.f32 %v2634_v35, %v464_v18 }
  0xf7   : > { %v685_v38 = vpop.f32.mrb[1].mxu1  ;;  %v2695_v12 = vadd.f32 %v559_v37, %v459_v50  ;;  %v1297_v37 = vrot.slane %v2164_v60, %v574_v5  ;;  %v1309_v50 = vrot.slane %v2164_v60, %v586_v6  ;;  %v1305_v6 = vrot.slane %v2164_v60, %v582_v8  ;;  %v2744_v8 = vld [vmem:[%s3100_s6 + $0x8] sm:$0xff] }
  0xf8   : > { %2136 = vmatprep.subr.msk.mxu0 %vm479_vm1, %v685_v38  ;;  %v2791_v60 = vld [vmem:[%s3100_s6 + $0x28] sm:$0xff] }
  0xf9   : > { %2137 = vmatpush1.msk.msra.mxu0 %vm479_vm1, %v683_v36  ;;  %vm1310_vm3 = vcmp.eq.s32.totalorder %v2533_v3, %v1297_v37  ;;  %vm1314_vm5 = vcmp.eq.s32.totalorder %v2545_v7, %v1297_v37  ;;  %vm1313_vm6 = vcmp.eq.s32.totalorder %v2533_v3, %v1309_v50  ;;  %vm1317_vm7 = vcmp.eq.s32.totalorder %v2545_v7, %v1309_v50 }
  0xfa   : > { %v754_v40 = vpop.f32.mrb[2].mxu1  ;;  %2138 = vmatmul.mubr.msk.f32.vlgmr.msra.gmra.mrb[4].mxu0 %vm466_vm0, %v2639_v39  ;;  %vm2257_vm9 = vmpackc.low %vm1314_vm5, %vm1310_vm3  ;;  %vm1312_vm11 = vcmp.eq.s32.totalorder %v2533_v3, %v1305_v6  ;;  %vm1316_vm13 = vcmp.eq.s32.totalorder %v2545_v7, %v1305_v6  ;;  %v2757_v3 = vld [vmem:[%s3100_s6 + $0x10] sm:$0xff]  ;;  %v2769_v7 = vld [vmem:[%s3100_s6 + $0x18] sm:$0xff] }
  0xfb   : > { %v756_v41 = vpop.f32.mrb[3].mxu1  ;;  %853 = vmatprep.mubr.f32.mxu0 %v2421_v2  ;;  %vm2259_vm10 = vmpackc.low %vm1317_vm7, %vm1313_vm6 }
  0xfc   : > { %2142 = vmatprep.subr.msk.mxu1 %vm479_vm1, %v756_v41  ;;  %vm2261_vm14 = vmpackc.low %vm1316_vm13, %vm1312_vm11 }
  0xfd   : > { %2143 = vmatpush1.msk.msra.mxu1 %vm479_vm1, %v754_v40 }
  0xfe   : > { %2139 = vmatmul.mubr.msk.f32.gmra.mrb[6].mxu0 %vm466_vm0, %v2649_v42  ;;  %2144 = vmatmul.mubr.msk.f32.vlgmr.msra.gmra.mrb[4].mxu1 %vm466_vm0, %v2639_v39 }
  0xff   : > { %859 = vmatprep.mubr.f32.mxu0 %v2421_v2  ;;  %942 = vmatprep.mubr.f32.mxu1 %v2421_v2 }
 0x102   : > { %2140 = vmatmul.mubr.msk.f32.gmra.mrb[8].mxu0 %vm466_vm0, %v2662_v43  ;;  %2145 = vmatmul.mubr.msk.f32.gmra.mrb[6].mxu1 %vm466_vm0, %v2649_v42 }
 0x103   : > { %865 = vmatprep.mubr.f32.mxu0 %v2421_v2  ;;  %948 = vmatprep.mubr.f32.mxu1 %v2421_v2 }
 0x106   : > { %2141 = vmatmul.mubr.msk.f32.gmra.mrb[10].mxu0 %vm466_vm0, %v2673_v44  ;;  %2146 = vmatmul.mubr.msk.f32.gmra.mrb[8].mxu1 %vm466_vm0, %v2662_v43 }
 0x107   : > { %954 = vmatprep.mubr.f32.mxu1 %v2421_v2  ;;  %1066 = vmatprep.mubr.f32.mxu0 %v2421_v2 }
 0x10a   : > { %2147 = vmatmul.mubr.msk.f32.gmra.mrb[10].mxu1 %vm466_vm0, %v2673_v44 }
 0x10b   : > { %1179 = vmatprep.mubr.f32.mxu1 %v2421_v2 }
 0x1cd   : > { %v849_v46 = vpop.f32.mrb[4].mxu0 }
 0x1ce   : > { %v851_v48 = vpop.f32.mrb[5].mxu0  ;;  %v850_v52 = vadd.f32 %v849_v46, %v2684_v47 }
 0x1cf   : > { %v852_v53 = vadd.f32 %v851_v48, %v2684_v47 }
 0x1d0   : > { %v961_v61 = vmax.f32 %v850_v52, 0.0 }
 0x1d1   : > { %v855_v54 = vpop.f32.mrb[6].mxu0  ;;  %v938_v55 = vpop.f32.mrb[4].mxu1  ;;  %v962_v0 = vmax.f32 %v852_v53, 0.0 }
 0x1d2   : > { %v856_v56 = vadd.f32 %v855_v54, %v2686_v51  ;;  %v857_v57 = vpop.f32.mrb[7].mxu0  ;;  %v940_v58 = vpop.f32.mrb[5].mxu1  ;;  %v939_v63 = vadd.f32 %v938_v55, %v2684_v47 }
 0x1d3   : > { %v858_v59 = vadd.f32 %v857_v57, %v2686_v51  ;;  %v941_v9 = vadd.f32 %v940_v58, %v2684_v47 }
 0x1d4   : > { %v965_v62 = vmax.f32 %v856_v56, 0.0  ;;  %v963_v24 = vmax.f32 %v939_v63, 0.0 }
 0x1d5   : > { %v966_v1 = vmax.f32 %v858_v59, 0.0  ;;  %v861_v10 = vpop.f32.mrb[8].mxu0  ;;  %v944_v11 = vpop.f32.mrb[6].mxu1  ;;  %v964_v27 = vmax.f32 %v941_v9, 0.0 }
 0x1d6   : > { %v2241_v13 = vpack.c.bf16 %v965_v62, %v961_v61  ;;  %v945_v14 = vadd.f32 %v944_v11, %v2686_v51  ;;  %v863_v15 = vpop.f32.mrb[9].mxu0  ;;  %v946_v16 = vpop.f32.mrb[7].mxu1  ;;  %v862_v25 = vadd.f32 %v861_v10, %v2695_v12  ;;  %v2731_v62 = vld [vmem:[%s3100_s6] sm:$0xff] }
 0x1d7   : > { %v2239_v20 = vpack.c.bf16 %v966_v1, %v962_v0  ;;  %v947_v21 = vadd.f32 %v946_v16, %v2686_v51  ;;  %v864_v28 = vadd.f32 %v863_v15, %v2695_v12  ;;  %v2802_v0 = vld [vmem:[%s3100_s6 + $0x30] sm:$0xff]  ;;  %v2813_v1 = vld [vmem:[%s3100_s6 + $0x38] sm:$0xff]  ;;  %v2830_v9 = vpop.permute.xlu0 %408  ;;  %v2834_v15 = vpop.permute.xlu1 %413 }
 0x1d8   : > { %v967_v26 = vmax.f32 %v945_v14, 0.0  ;;  %v969_v38 = vmax.f32 %v862_v25, 0.0 }
 0x1d9   : > { %v968_v29 = vmax.f32 %v947_v21, 0.0  ;;  %v867_v30 = vpop.f32.mrb[10].mxu0  ;;  %v950_v31 = vpop.f32.mrb[8].mxu1  ;;  %2240 = vmatprep.subr.bf16.mxu0 %v2239_v20  ;;  %v970_v45 = vmax.f32 %v864_v28, 0.0 }
 0x1da   : > { %v2249_v32 = vpack.c.bf16 %v967_v26, %v963_v24  ;;  %v868_v33 = vadd.f32 %v867_v30, %v2702_v23  ;;  %v869_v34 = vpop.f32.mrb[11].mxu0  ;;  %v952_v36 = vpop.f32.mrb[9].mxu1  ;;  %2242 = vmatpush1.bf16.msra.mxu0 %v2241_v13  ;;  %v951_v41 = vadd.f32 %v950_v31, %v2695_v12 }
 0x1db   : > { %v2247_v4 = vpack.c.bf16 %v968_v29, %v964_v27  ;;  %v870_v35 = vadd.f32 %v869_v34, %v2702_v23  ;;  %v953_v48 = vadd.f32 %v952_v36, %v2695_v12  ;;  %v2840_v29 = vpop.permute.xlu0 %418 }
 0x1dc   : > { %v973_v40 = vmax.f32 %v868_v33, 0.0  ;;  %v971_v56 = vmax.f32 %v951_v41, 0.0 }
 0x1dd   : > { %v974_v46 = vmax.f32 %v870_v35, 0.0  ;;  %v956_v49 = vpop.f32.mrb[10].mxu1  ;;  %2248 = vmatprep.subr.bf16.mxu1 %v2247_v4  ;;  %v972_v58 = vmax.f32 %v953_v48, 0.0 }
 0x1de   : > { %v2245_v52 = vpack.c.bf16 %v973_v40, %v969_v38  ;;  %v957_v53 = vadd.f32 %v956_v49, %v2702_v23  ;;  %v958_v54 = vpop.f32.mrb[11].mxu1  ;;  %2250 = vmatpush1.bf16.msra.mxu1 %v2249_v32  ;;  %v2846_v49 = vpop.permute.xlu1 %423 }
 0x1df   : > { %v2243_v5 = vpack.c.bf16 %v974_v46, %v970_v45  ;;  %v959_v55 = vadd.f32 %v958_v54, %v2702_v23 }
 0x1e0   : > { %v975_v57 = vmax.f32 %v957_v53, 0.0 }
 0x1e1   : > { %v976_v59 = vmax.f32 %v959_v55, 0.0  ;;  %2244 = vmatprep.subr.bf16.mxu0 %v2243_v5 }
 0x1e2   : > { %v2253_v61 = vpack.c.bf16 %v975_v57, %v971_v56  ;;  %2246 = vmatpush1.bf16.msra.mxu0 %v2245_v52 }
 0x1e3   : > { %v2251_v63 = vpack.c.bf16 %v976_v59, %v972_v58  ;;  %2256 = vmatprep.subr.msk.bf16.mxu0 %vm2255_vm4, %v2422_v17 }
 0x1e5   : > { %2148 = vmatmul.mubr.msk.f32.vlgmr.msra.gmra.mrb[12].mxu0 %vm977_vm8, %v2731_v62  ;;  %2252 = vmatprep.subr.bf16.mxu1 %v2251_v63 }
 0x1e6   : > { %2254 = vmatpush1.bf16.msra.mxu1 %v2253_v61  ;;  %1072 = vmatprep.mubr.f32.mxu0 %v2421_v2 }
 0x1e7   : > { %2258 = vmatpush1.bf16.msk.msra.mxu0 %vm2257_vm9, %v2422_v17  ;;  %2260 = vmatprep.subr.msk.bf16.mxu1 %vm2259_vm10, %v2422_v17 }
 0x1e9   : > { %2149 = vmatmul.mubr.msk.f32.gmra.mrb[14].mxu0 %vm977_vm8, %v2744_v8  ;;  %2156 = vmatmul.mubr.msk.f32.vlgmr.msra.gmra.mrb[12].mxu1 %vm977_vm8, %v2731_v62 }
 0x1ea   : > { %1078 = vmatprep.mubr.f32.mxu0 %v2421_v2  ;;  %1185 = vmatprep.mubr.f32.mxu1 %v2421_v2 }
 0x1eb   : > { %2262 = vmatpush1.bf16.msk.msra.mxu1 %vm2261_vm14, %v2422_v17  ;;  %v2780_v17 = vld [vmem:[%s3100_s6 + $0x20] sm:$0xff] }
 0x1ed   : > { %2150 = vmatmul.mubr.msk.f32.gmra.mrb[16].mxu0 %vm977_vm8, %v2757_v3  ;;  %2157 = vmatmul.mubr.msk.f32.gmra.mrb[14].mxu1 %vm977_vm8, %v2744_v8 }
 0x1ee   : > { %1084 = vmatprep.mubr.f32.mxu0 %v2421_v2  ;;  %1191 = vmatprep.mubr.f32.mxu1 %v2421_v2 }
 0x1f1   : > { %2151 = vmatmul.mubr.msk.f32.gmra.mrb[18].mxu0 %vm977_vm8, %v2769_v7  ;;  %2158 = vmatmul.mubr.msk.f32.gmra.mrb[16].mxu1 %vm977_vm8, %v2757_v3 }
 0x1f2   : > { %1090 = vmatprep.mubr.f32.mxu0 %v2421_v2  ;;  %1197 = vmatprep.mubr.f32.mxu1 %v2421_v2 }
 0x1f5   : > { %2152 = vmatmul.mubr.msk.f32.gmra.mrb[20].mxu0 %vm977_vm8, %v2780_v17  ;;  %2159 = vmatmul.mubr.msk.f32.gmra.mrb[18].mxu1 %vm977_vm8, %v2769_v7 }
 0x1f6   : > { %1096 = vmatprep.mubr.f32.mxu0 %v2421_v2  ;;  %1203 = vmatprep.mubr.f32.mxu1 %v2421_v2 }
 0x1f9   : > { %2153 = vmatmul.mubr.msk.f32.gmra.mrb[22].mxu0 %vm977_vm8, %v2791_v60  ;;  %2160 = vmatmul.mubr.msk.f32.gmra.mrb[20].mxu1 %vm977_vm8, %v2780_v17 }
 0x1fa   : > { %1102 = vmatprep.mubr.f32.mxu0 %v2421_v2  ;;  %1209 = vmatprep.mubr.f32.mxu1 %v2421_v2 }
 0x1fd   : > { %2154 = vmatmul.mubr.msk.f32.gmra.mrb[24].mxu0 %vm977_vm8, %v2802_v0  ;;  %2161 = vmatmul.mubr.msk.f32.gmra.mrb[22].mxu1 %vm977_vm8, %v2791_v60 }
 0x1fe   : > { %1108 = vmatprep.mubr.f32.mxu0 %v2421_v2  ;;  %1215 = vmatprep.mubr.f32.mxu1 %v2421_v2 }
 0x201   : > { %2155 = vmatmul.mubr.msk.f32.gmra.mrb[26].mxu0 %vm977_vm8, %v2813_v1  ;;  %2162 = vmatmul.mubr.msk.f32.gmra.mrb[24].mxu1 %vm977_vm8, %v2802_v0 }
 0x202   : > { %1221 = vmatprep.mubr.f32.mxu1 %v2421_v2  ;;  %1398 = vmatprep.mubr.f32.mxu0 %v2421_v2 }
 0x205   : > { %2163 = vmatmul.mubr.msk.f32.gmra.mrb[26].mxu1 %vm977_vm8, %v2813_v1  ;;  %2177 = vmatmul.mubr.msk.f32.vlgmr.msra.gmra.mrb[28].mxu0 %vm613_vm12, %v2586_v19 }
 0x206   : > { %1469 = vmatprep.mubr.f32.mxu1 %v2421_v2  ;;  %1552 = vmatprep.mubr.f32.mxu0 %v2421_v2 }
 0x209   : > { %2182 = vmatmul.mubr.msk.f32.vlgmr.msra.gmra.mrb[28].mxu1 %vm613_vm12, %v2586_v19 }
 0x20a   : > { %1641 = vmatprep.mubr.f32.mxu1 %v2421_v2 }
 0x2b8   : > { %v1068_v10 = vpop.f32.mrb[12].mxu0 }
 0x2b9   : > { %v1069_v11 = vadd.f32 %v1068_v10, %v2830_v9  ;;  %v1070_v13 = vpop.f32.mrb[13].mxu0 }
 0x2ba   : > { %v1071_v14 = vadd.f32 %v1070_v13, %v2830_v9 }
 0x2bb   : > { %v1228_v16 = vmax.f32 %v1069_v11, 0.0 }
 0x2bc   : > { %v1229_v18 = vmax.f32 %v1071_v14, 0.0  ;;  %v1074_v20 = vpop.f32.mrb[14].mxu0  ;;  %v1181_v21 = vpop.f32.mrb[12].mxu1 }
 0x2bd   : > { %v1260_v22 = vmax.f32 %v1228_v16, 0.0  ;;  %v1075_v24 = vadd.f32 %v1074_v20, %v2834_v15  ;;  %v1182_v19 = vadd.f32 %v1181_v21, %v2830_v9  ;;  %v1076_v25 = vpop.f32.mrb[15].mxu0  ;;  %v1183_v26 = vpop.f32.mrb[13].mxu1 }
 0x2be   : > { %v1077_v27 = vadd.f32 %v1076_v25, %v2834_v15  ;;  %v1184_v28 = vadd.f32 %v1183_v26, %v2830_v9  ;;  %v2854_v14 = vpop.permute.xlu0 %428 }
 0x2bf   : > { %v1268_v30 = vmax.f32 %v1260_v22, %v1229_v18  ;;  %v1232_v31 = vmax.f32 %v1075_v24, 0.0  ;;  %v1230_v32 = vmax.f32 %v1182_v19, 0.0 }
 0x2c0   : > { %v1233_v33 = vmax.f32 %v1077_v27, 0.0  ;;  %v1231_v34 = vmax.f32 %v1184_v28, 0.0  ;;  %v1080_v36 = vpop.f32.mrb[16].mxu0  ;;  %v1187_v4 = vpop.f32.mrb[14].mxu1 }
 0x2c1   : > { %v1261_v35 = vmax.f32 %v1232_v31, 0.0  ;;  %v1276_v37 = vmax.f32 %v1268_v30, %v1230_v32  ;;  %v1081_v38 = vadd.f32 %v1080_v36, %v2840_v29  ;;  %v1188_v40 = vadd.f32 %v1187_v4, %v2834_v15  ;;  %v1082_v41 = vpop.f32.mrb[17].mxu0  ;;  %v1189_v45 = vpop.f32.mrb[15].mxu1 }
 0x2c2   : > { %v1083_v46 = vadd.f32 %v1082_v41, %v2840_v29  ;;  %v1190_v48 = vadd.f32 %v1189_v45, %v2834_v15  ;;  %v2862_v36 = vpop.permute.xlu1 %433 }
 0x2c3   : > { %v1269_v50 = vmax.f32 %v1261_v35, %v1233_v33  ;;  %v2848_v52 = vmax.f32 %v1276_v37, %v1231_v34  ;;  %v1236_v53 = vmax.f32 %v1081_v38, 0.0  ;;  %v1234_v54 = vmax.f32 %v1188_v40, 0.0 }
 0x2c4   : > { %v1237_v5 = vmax.f32 %v1083_v46, 0.0  ;;  %v1235_v55 = vmax.f32 %v1190_v48, 0.0  ;;  %v1086_v56 = vpop.f32.mrb[18].mxu0  ;;  %v1193_v57 = vpop.f32.mrb[16].mxu1 }
 0x2c5   : > { %v1262_v6 = vmax.f32 %v1236_v53, 0.0  ;;  %v1277_v58 = vmax.f32 %v1269_v50, %v1234_v54  ;;  %v1087_v59 = vadd.f32 %v1086_v56, %v2846_v49  ;;  %v1194_v61 = vadd.f32 %v1193_v57, %v2840_v29  ;;  %v1088_v63 = vpop.f32.mrb[19].mxu0  ;;  %v1195_v10 = vpop.f32.mrb[17].mxu1 }
 0x2c6   : > { %v1089_v11 = vadd.f32 %v1088_v63, %v2846_v49  ;;  %v1196_v13 = vadd.f32 %v1195_v10, %v2840_v29 }
 0x2c7   : > { %v1270_v16 = vmax.f32 %v1262_v6, %v1237_v5  ;;  %v2856_v18 = vmax.f32 %v1277_v58, %v1235_v55  ;;  %v1240_v20 = vmax.f32 %v1087_v59, 0.0  ;;  %v1238_v21 = vmax.f32 %v1194_v61, 0.0  ;;  %v2870_v6 = vpop.permute.xlu0 %438 }
 0x2c8   : > { %v1241_v22 = vmax.f32 %v1089_v11, 0.0  ;;  %v1239_v24 = vmax.f32 %v1196_v13, 0.0  ;;  %v1092_v19 = vpop.f32.mrb[20].mxu0  ;;  %v1199_v25 = vpop.f32.mrb[18].mxu1 }
 0x2c9   : > { %v1263_v26 = vmax.f32 %v1240_v20, 0.0  ;;  %v1278_v27 = vmax.f32 %v1270_v16, %v1238_v21  ;;  %v1093_v28 = vadd.f32 %v1092_v19, %v2854_v14  ;;  %v1200_v30 = vadd.f32 %v1199_v25, %v2846_v49  ;;  %v1094_v31 = vpop.f32.mrb[21].mxu0  ;;  %v1201_v32 = vpop.f32.mrb[19].mxu1 }
 0x2ca   : > { %v1095_v33 = vadd.f32 %v1094_v31, %v2854_v14  ;;  %v1202_v34 = vadd.f32 %v1201_v32, %v2846_v49 }
 0x2cb   : > { %v1271_v4 = vmax.f32 %v1263_v26, %v1241_v22  ;;  %v2864_v35 = vmax.f32 %v1278_v27, %v1239_v24  ;;  %v1244_v37 = vmax.f32 %v1093_v28, 0.0  ;;  %v1242_v38 = vmax.f32 %v1200_v30, 0.0  ;;  %v2878_v28 = vpop.permute.xlu1 %443 }
 0x2cc   : > { %v1245_v40 = vmax.f32 %v1095_v33, 0.0  ;;  %v1243_v41 = vmax.f32 %v1202_v34, 0.0  ;;  %v1098_v45 = vpop.f32.mrb[22].mxu0  ;;  %v1205_v46 = vpop.f32.mrb[20].mxu1 }
 0x2cd   : > { %v1264_v48 = vmax.f32 %v1244_v37, 0.0  ;;  %v1279_v50 = vmax.f32 %v1271_v4, %v1242_v38  ;;  %v1099_v53 = vadd.f32 %v1098_v45, %v2862_v36  ;;  %v1206_v54 = vadd.f32 %v1205_v46, %v2854_v14  ;;  %v1100_v5 = vpop.f32.mrb[23].mxu0  ;;  %v1207_v55 = vpop.f32.mrb[21].mxu1 }
 0x2ce   : > { %v1101_v56 = vadd.f32 %v1100_v5, %v2862_v36  ;;  %v1208_v57 = vadd.f32 %v1207_v55, %v2854_v14 }
 0x2cf   : > { %v1272_v58 = vmax.f32 %v1264_v48, %v1245_v40  ;;  %v2872_v59 = vmax.f32 %v1279_v50, %v1243_v41  ;;  %v1248_v61 = vmax.f32 %v1099_v53, 0.0  ;;  %v1246_v63 = vmax.f32 %v1206_v54, 0.0 }
 0x2d0   : > { %v1249_v10 = vmax.f32 %v1101_v56, 0.0  ;;  %v1247_v11 = vmax.f32 %v1208_v57, 0.0  ;;  %v1104_v13 = vpop.f32.mrb[24].mxu0  ;;  %v1211_v16 = vpop.f32.mrb[22].mxu1 }
 0x2d1   : > { %v1265_v20 = vmax.f32 %v1248_v61, 0.0  ;;  %v1280_v21 = vmax.f32 %v1272_v58, %v1246_v63  ;;  %v1105_v22 = vadd.f32 %v1104_v13, %v2870_v6  ;;  %v1212_v24 = vadd.f32 %v1211_v16, %v2862_v36  ;;  %v1106_v19 = vpop.f32.mrb[25].mxu0  ;;  %v1213_v25 = vpop.f32.mrb[23].mxu1 }
 0x2d2   : > { %v1107_v26 = vadd.f32 %v1106_v19, %v2870_v6  ;;  %v1214_v27 = vadd.f32 %v1213_v25, %v2862_v36 }
 0x2d3   : > { %v1273_v30 = vmax.f32 %v1265_v20, %v1249_v10  ;;  %v2880_v31 = vmax.f32 %v1280_v21, %v1247_v11  ;;  %v1252_v32 = vmax.f32 %v1105_v22, 0.0  ;;  %v1250_v33 = vmax.f32 %v1212_v24, 0.0 }
 0x2d4   : > { %v1253_v34 = vmax.f32 %v1107_v26, 0.0  ;;  %v1251_v4 = vmax.f32 %v1214_v27, 0.0  ;;  %v1110_v37 = vpop.f32.mrb[26].mxu0  ;;  %v1217_v38 = vpop.f32.mrb[24].mxu1 }
 0x2d5   : > { %v1266_v40 = vmax.f32 %v1252_v32, 0.0  ;;  %v1281_v41 = vmax.f32 %v1273_v30, %v1250_v33  ;;  %v1111_v45 = vadd.f32 %v1110_v37, %v2878_v28  ;;  %v1218_v46 = vadd.f32 %v1217_v38, %v2870_v6  ;;  %v1112_v48 = vpop.f32.mrb[27].mxu0  ;;  %v1219_v50 = vpop.f32.mrb[25].mxu1 }
 0x2d6   : > { %v1113_v53 = vadd.f32 %v1112_v48, %v2878_v28  ;;  %v1220_v54 = vadd.f32 %v1219_v50, %v2870_v6 }
 0x2d7   : > { %v1274_v5 = vmax.f32 %v1266_v40, %v1253_v34  ;;  %v2886_v55 = vmax.f32 %v1281_v41, %v1251_v4  ;;  %v1256_v56 = vmax.f32 %v1111_v45, 0.0  ;;  %v1254_v57 = vmax.f32 %v1218_v46, 0.0 }
 0x2d8   : > { %v1257_v58 = vmax.f32 %v1113_v53, 0.0  ;;  %v1255_v61 = vmax.f32 %v1220_v54, 0.0  ;;  %v1223_v63 = vpop.f32.mrb[26].mxu1  ;;  %v1400_v10 = vpop.f32.mrb[28].mxu0 }
 0x2d9   : > { %v1267_v11 = vmax.f32 %v1256_v56, 0.0  ;;  %v1282_v13 = vmax.f32 %v1274_v5, %v1254_v57  ;;  %v1224_v16 = vadd.f32 %v1223_v63, %v2878_v28  ;;  %v1225_v20 = vpop.f32.mrb[27].mxu1  ;;  %v1402_v21 = vpop.f32.mrb[29].mxu0 }
 0x2da   : > { %v1226_v22 = vadd.f32 %v1225_v20, %v2878_v28  ;;  %2183 = vmatprep.subr.msk.mxu0 %vm479_vm1, %v1402_v21 }
 0x2db   : > { %v1275_v24 = vmax.f32 %v1267_v11, %v1257_v58  ;;  %v2891_v19 = vmax.f32 %v1282_v13, %v1255_v61  ;;  %v1258_v25 = vmax.f32 %v1224_v16, 0.0  ;;  %2184 = vmatpush1.msk.msra.mxu0 %vm479_vm1, %v1400_v10 }
 0x2dc   : > { %v1259_v26 = vmax.f32 %v1226_v22, 0.0  ;;  %v1471_v27 = vpop.f32.mrb[28].mxu1  ;;  %2185 = vmatmul.mubr.msk.f32.vlgmr.msra.gmra.mrb[30].mxu0 %vm466_vm0, %v2639_v39 }
 0x2dd   : > { %v1283_v30 = vmax.f32 %v1275_v24, %v1258_v25  ;;  %v1473_v32 = vpop.f32.mrb[29].mxu1  ;;  %1558 = vmatprep.mubr.f32.mxu0 %v2421_v2 }
 0x2de   : > { %2189 = vmatprep.subr.msk.mxu1 %vm479_vm1, %v1473_v32 }
 0x2df   : > { %v2898_v33 = vmax.f32 %v1283_v30, %v1259_v26  ;;  %2190 = vmatpush1.msk.msra.mxu1 %vm479_vm1, %v1471_v27 }
 0x2e0   : > { %2186 = vmatmul.mubr.msk.f32.gmra.mrb[32].mxu0 %vm466_vm0, %v2649_v42  ;;  %2191 = vmatmul.mubr.msk.f32.vlgmr.msra.gmra.mrb[30].mxu1 %vm466_vm0, %v2639_v39 }
 0x2e1   : > { %1564 = vmatprep.mubr.f32.mxu0 %v2421_v2  ;;  %1647 = vmatprep.mubr.f32.mxu1 %v2421_v2 }
 0x2e4   : > { %2187 = vmatmul.mubr.msk.f32.gmra.mrb[34].mxu0 %vm466_vm0, %v2662_v43  ;;  %2192 = vmatmul.mubr.msk.f32.gmra.mrb[32].mxu1 %vm466_vm0, %v2649_v42 }
 0x2e5   : > { %1570 = vmatprep.mubr.f32.mxu0 %v2421_v2  ;;  %1653 = vmatprep.mubr.f32.mxu1 %v2421_v2 }
 0x2e8   : > { %2188 = vmatmul.mubr.msk.f32.gmra.mrb[36].mxu0 %vm466_vm0, %v2673_v44  ;;  %2193 = vmatmul.mubr.msk.f32.gmra.mrb[34].mxu1 %vm466_vm0, %v2662_v43 }
 0x2e9   : > { %1659 = vmatprep.mubr.f32.mxu1 %v2421_v2  ;;  %1746 = vmatprep.mubr.f32.mxu0 %v2421_v2 }
 0x2ec   : > { %2194 = vmatmul.mubr.msk.f32.gmra.mrb[36].mxu1 %vm466_vm0, %v2673_v44 }
 0x2ed   : > { %1859 = vmatprep.mubr.f32.mxu1 %v2421_v2 }
 0x3af   : > { %v1554_v39 = vpop.f32.mrb[30].mxu0 }
 0x3b0   : > { %v1556_v42 = vpop.f32.mrb[31].mxu0  ;;  %v1555_v34 = vadd.f32 %v1554_v39, %v2684_v47 }
 0x3b1   : > { %v1557_v4 = vadd.f32 %v1556_v42, %v2684_v47 }
 0x3b2   : > { %v1666_v46 = vmax.f32 %v1555_v34, 0.0 }
 0x3b3   : > { %v1560_v37 = vpop.f32.mrb[32].mxu0  ;;  %v1643_v38 = vpop.f32.mrb[30].mxu1  ;;  %v1667_v50 = vmax.f32 %v1557_v4, 0.0 }
 0x3b4   : > { %v1561_v40 = vadd.f32 %v1560_v37, %v2686_v51  ;;  %v1562_v43 = vpop.f32.mrb[33].mxu0  ;;  %v1645_v41 = vpop.f32.mrb[31].mxu1  ;;  %v1644_v44 = vadd.f32 %v1643_v38, %v2684_v47 }
 0x3b5   : > { %v1563_v45 = vadd.f32 %v1562_v43, %v2686_v51  ;;  %v1646_v54 = vadd.f32 %v1645_v41, %v2684_v47 }
 0x3b6   : > { %v1670_v48 = vmax.f32 %v1561_v40, 0.0  ;;  %v1668_v13 = vmax.f32 %v1644_v44, 0.0 }
 0x3b7   : > { %v1671_v53 = vmax.f32 %v1563_v45, 0.0  ;;  %v1566_v5 = vpop.f32.mrb[34].mxu0  ;;  %v1649_v56 = vpop.f32.mrb[32].mxu1  ;;  %v1669_v21 = vmax.f32 %v1646_v54, 0.0 }
 0x3b8   : > { %v2265_v57 = vpack.c.bf16 %v1670_v48, %v1666_v46  ;;  %v1650_v58 = vadd.f32 %v1649_v56, %v2686_v51  ;;  %v1568_v61 = vpop.f32.mrb[35].mxu0  ;;  %v1651_v63 = vpop.f32.mrb[33].mxu1  ;;  %v1567_v16 = vadd.f32 %v1566_v5, %v2695_v12 }
 0x3b9   : > { %v2263_v10 = vpack.c.bf16 %v1671_v53, %v1667_v50  ;;  %v1652_v11 = vadd.f32 %v1651_v63, %v2686_v51  ;;  %v1569_v22 = vadd.f32 %v1568_v61, %v2695_v12 }
 0x3ba   : > { %v1672_v20 = vmax.f32 %v1650_v58, 0.0  ;;  %v1674_v42 = vmax.f32 %v1567_v16, 0.0 }
 0x3bb   : > { %v1673_v24 = vmax.f32 %v1652_v11, 0.0  ;;  %v1572_v25 = vpop.f32.mrb[36].mxu0  ;;  %v1655_v47 = vpop.f32.mrb[34].mxu1  ;;  %2264 = vmatprep.subr.bf16.mxu0 %v2263_v10  ;;  %v1675_v37 = vmax.f32 %v1569_v22, 0.0 }
 0x3bc   : > { %v2273_v26 = vpack.c.bf16 %v1672_v20, %v1668_v13  ;;  %v1573_v27 = vadd.f32 %v1572_v25, %v2702_v23  ;;  %v1574_v30 = vpop.f32.mrb[37].mxu0  ;;  %v1657_v32 = vpop.f32.mrb[35].mxu1  ;;  %2266 = vmatpush1.bf16.msra.mxu0 %v2265_v57  ;;  %v1656_v4 = vadd.f32 %v1655_v47, %v2695_v12 }
 0x3bd   : > { %v2271_v39 = vpack.c.bf16 %v1673_v24, %v1669_v21  ;;  %v1575_v51 = vadd.f32 %v1574_v30, %v2702_v23  ;;  %v1658_v40 = vadd.f32 %v1657_v32, %v2695_v12 }
 0x3be   : > { %v1678_v34 = vmax.f32 %v1573_v27, 0.0  ;;  %v1676_v50 = vmax.f32 %v1656_v4, 0.0 }
 0x3bf   : > { %v1679_v38 = vmax.f32 %v1575_v51, 0.0  ;;  %v1661_v43 = vpop.f32.mrb[36].mxu1  ;;  %2272 = vmatprep.subr.bf16.mxu1 %v2271_v39  ;;  %v1677_v54 = vmax.f32 %v1658_v40, 0.0 }
 0x3c0   : > { %v2269_v41 = vpack.c.bf16 %v1678_v34, %v1674_v42  ;;  %v1662_v45 = vadd.f32 %v1661_v43, %v2702_v23  ;;  %v1663_v46 = vpop.f32.mrb[37].mxu1  ;;  %2274 = vmatpush1.bf16.msra.mxu1 %v2273_v26 }
 0x3c1   : > { %v2267_v48 = vpack.c.bf16 %v1679_v38, %v1675_v37  ;;  %v1664_v44 = vadd.f32 %v1663_v46, %v2702_v23 }
 0x3c2   : > { %v1680_v53 = vmax.f32 %v1662_v45, 0.0 }
 0x3c3   : > { %v1681_v5 = vmax.f32 %v1664_v44, 0.0  ;;  %2268 = vmatprep.subr.bf16.mxu0 %v2267_v48 }
 0x3c4   : > { %v2277_v56 = vpack.c.bf16 %v1680_v53, %v1676_v50  ;;  %2270 = vmatpush1.bf16.msra.mxu0 %v2269_v41 }
 0x3c5   : > { %v2275_v57 = vpack.c.bf16 %v1681_v5, %v1677_v54 }
 0x3c7   : > { %2195 = vmatmul.mubr.msk.f32.vlgmr.msra.gmra.mrb[38].mxu0 %vm977_vm8, %v2731_v62  ;;  %2276 = vmatprep.subr.bf16.mxu1 %v2275_v57 }
 0x3c8   : > { %2278 = vmatpush1.bf16.msra.mxu1 %v2277_v56  ;;  %1752 = vmatprep.mubr.f32.mxu0 %v2421_v2 }
 0x3cb   : > { %2196 = vmatmul.mubr.msk.f32.gmra.mrb[40].mxu0 %vm977_vm8, %v2744_v8  ;;  %2203 = vmatmul.mubr.msk.f32.vlgmr.msra.gmra.mrb[38].mxu1 %vm977_vm8, %v2731_v62 }
 0x3cc   : > { %1758 = vmatprep.mubr.f32.mxu0 %v2421_v2  ;;  %1865 = vmatprep.mubr.f32.mxu1 %v2421_v2 }
 0x3cf   : > { %2197 = vmatmul.mubr.msk.f32.gmra.mrb[42].mxu0 %vm977_vm8, %v2757_v3  ;;  %2204 = vmatmul.mubr.msk.f32.gmra.mrb[40].mxu1 %vm977_vm8, %v2744_v8 }
 0x3d0   : > { %1764 = vmatprep.mubr.f32.mxu0 %v2421_v2  ;;  %1871 = vmatprep.mubr.f32.mxu1 %v2421_v2 }
 0x3d3   : > { %2198 = vmatmul.mubr.msk.f32.gmra.mrb[44].mxu0 %vm977_vm8, %v2769_v7  ;;  %2205 = vmatmul.mubr.msk.f32.gmra.mrb[42].mxu1 %vm977_vm8, %v2757_v3 }
 0x3d4   : > { %1770 = vmatprep.mubr.f32.mxu0 %v2421_v2  ;;  %1877 = vmatprep.mubr.f32.mxu1 %v2421_v2 }
 0x3d7   : > { %2199 = vmatmul.mubr.msk.f32.gmra.mrb[46].mxu0 %vm977_vm8, %v2780_v17  ;;  %2206 = vmatmul.mubr.msk.f32.gmra.mrb[44].mxu1 %vm977_vm8, %v2769_v7 }
 0x3d8   : > { %1776 = vmatprep.mubr.f32.mxu0 %v2421_v2  ;;  %1883 = vmatprep.mubr.f32.mxu1 %v2421_v2 }
 0x3db   : > { %2200 = vmatmul.mubr.msk.f32.gmra.mrb[48].mxu0 %vm977_vm8, %v2791_v60  ;;  %2207 = vmatmul.mubr.msk.f32.gmra.mrb[46].mxu1 %vm977_vm8, %v2780_v17 }
 0x3dc   : > { %1782 = vmatprep.mubr.f32.mxu0 %v2421_v2  ;;  %1889 = vmatprep.mubr.f32.mxu1 %v2421_v2 }
 0x3df   : > { %2201 = vmatmul.mubr.msk.f32.gmra.mrb[50].mxu0 %vm977_vm8, %v2802_v0  ;;  %2208 = vmatmul.mubr.msk.f32.gmra.mrb[48].mxu1 %vm977_vm8, %v2791_v60 }
 0x3e0   : > { %1788 = vmatprep.mubr.f32.mxu0 %v2421_v2  ;;  %1895 = vmatprep.mubr.f32.mxu1 %v2421_v2 }
 0x3e3   : > { %2202 = vmatmul.mubr.msk.f32.gmra.mrb[52].mxu0 %vm977_vm8, %v2813_v1  ;;  %2209 = vmatmul.mubr.msk.f32.gmra.mrb[50].mxu1 %vm977_vm8, %v2802_v0 }
 0x3e4   : > { %1901 = vmatprep.mubr.f32.mxu1 %v2421_v2 }
 0x3e7   : > { %2210 = vmatmul.mubr.msk.f32.gmra.mrb[52].mxu1 %vm977_vm8, %v2813_v1 }
 0x49a   : > { %v1748_v12 = vpop.f32.mrb[38].mxu0 }
 0x49b   : > { %v1749_v23 = vadd.f32 %v1748_v12, %v2830_v9  ;;  %v1750_v62 = vpop.f32.mrb[39].mxu0 }
 0x49c   : > { %v1751_v8 = vadd.f32 %v1750_v62, %v2830_v9 }
 0x49d   : > { %v1908_v3 = vmax.f32 %v1749_v23, 0.0 }
 0x49e   : > { %v1909_v7 = vmax.f32 %v1751_v8, 0.0  ;;  %v1754_v17 = vpop.f32.mrb[40].mxu0  ;;  %v1861_v60 = vpop.f32.mrb[38].mxu1 }
 0x49f   : > { %v1940_v58 = vmax.f32 %v2848_v52, %v1908_v3  ;;  %v1755_v0 = vadd.f32 %v1754_v17, %v2834_v15  ;;  %v1862_v2 = vadd.f32 %v1861_v60, %v2830_v9  ;;  %v1756_v61 = vpop.f32.mrb[41].mxu0  ;;  %v1863_v1 = vpop.f32.mrb[39].mxu1 }
 0x4a0   : > { %v1757_v63 = vadd.f32 %v1756_v61, %v2834_v15  ;;  %v1864_v10 = vadd.f32 %v1863_v1, %v2830_v9 }
 0x4a1   : > { %v1948_v11 = vmax.f32 %v1940_v58, %v1909_v7  ;;  %v1912_v13 = vmax.f32 %v1755_v0, 0.0  ;;  %v1910_v16 = vmax.f32 %v1862_v2, 0.0 }
 0x4a2   : > { %v1913_v20 = vmax.f32 %v1757_v63, 0.0  ;;  %v1911_v21 = vmax.f32 %v1864_v10, 0.0  ;;  %v1760_v22 = vpop.f32.mrb[42].mxu0  ;;  %v1867_v24 = vpop.f32.mrb[40].mxu1 }
 0x4a3   : > { %v1941_v52 = vmax.f32 %v2856_v18, %v1912_v13  ;;  %v1956_v25 = vmax.f32 %v1948_v11, %v1910_v16  ;;  %v1761_v47 = vadd.f32 %v1760_v22, %v2840_v29  ;;  %v1868_v26 = vadd.f32 %v1867_v24, %v2834_v15  ;;  %v1762_v27 = vpop.f32.mrb[43].mxu0  ;;  %v1869_v30 = vpop.f32.mrb[41].mxu1 }
 0x4a4   : > { %v1763_v9 = vadd.f32 %v1762_v27, %v2840_v29  ;;  %v1870_v32 = vadd.f32 %v1869_v30, %v2834_v15 }
 0x4a5   : > { %v1949_v39 = vmax.f32 %v1941_v52, %v1913_v20  ;;  %v1964_v51 = vmax.f32 %v1956_v25, %v1911_v21  ;;  %v1916_v42 = vmax.f32 %v1761_v47, 0.0  ;;  %v1914_v34 = vmax.f32 %v1868_v26, 0.0 }
 0x4a6   : > { %v1917_v4 = vmax.f32 %v1763_v9, 0.0  ;;  %v1915_v37 = vmax.f32 %v1870_v32, 0.0  ;;  %v1766_v38 = vpop.f32.mrb[44].mxu0  ;;  %v1873_v40 = vpop.f32.mrb[42].mxu1 }
 0x4a7   : > { %1972 = vst [vmem:[%s2999_s20] sm:$0xff] %v1964_v51  ;;  %v1942_v18 = vmax.f32 %v2864_v35, %v1916_v42  ;;  %v1957_v43 = vmax.f32 %v1949_v39, %v1914_v34  ;;  %v1767_v41 = vadd.f32 %v1766_v38, %v2846_v49  ;;  %v1874_v15 = vadd.f32 %v1873_v40, %v2840_v29  ;;  %v1768_v45 = vpop.f32.mrb[45].mxu0  ;;  %v1875_v46 = vpop.f32.mrb[43].mxu1 }
 0x4a8   : > { %v1769_v48 = vadd.f32 %v1768_v45, %v2846_v49  ;;  %v1876_v44 = vadd.f32 %v1875_v46, %v2840_v29 }
 0x4a9   : > { %v1950_v50 = vmax.f32 %v1942_v18, %v1917_v4  ;;  %v1965_v53 = vmax.f32 %v1957_v43, %v1915_v37  ;;  %v1920_v54 = vmax.f32 %v1767_v41, 0.0  ;;  %v1918_v5 = vmax.f32 %v1874_v15, 0.0 }
 0x4aa   : > { %v1921_v56 = vmax.f32 %v1769_v48, 0.0  ;;  %v1919_v57 = vmax.f32 %v1876_v44, 0.0  ;;  %v1772_v12 = vpop.f32.mrb[46].mxu0  ;;  %v1879_v35 = vpop.f32.mrb[44].mxu1 }
 0x4ab   : > { %1973 = vst [vmem:[%s2999_s20 + $0x8] sm:$0xff] %v1965_v53  ;;  %v1943_v23 = vmax.f32 %v2872_v59, %v1920_v54  ;;  %v1958_v62 = vmax.f32 %v1950_v50, %v1918_v5  ;;  %v1773_v8 = vadd.f32 %v1772_v12, %v2854_v14  ;;  %v1880_v3 = vadd.f32 %v1879_v35, %v2846_v49  ;;  %v1774_v7 = vpop.f32.mrb[47].mxu0  ;;  %v1881_v17 = vpop.f32.mrb[45].mxu1 }
 0x4ac   : > { %v1775_v29 = vadd.f32 %v1774_v7, %v2854_v14  ;;  %v1882_v60 = vadd.f32 %v1881_v17, %v2846_v49 }
 0x4ad   : > { %v1951_v58 = vmax.f32 %v1943_v23, %v1921_v56  ;;  %v1966_v0 = vmax.f32 %v1958_v62, %v1919_v57  ;;  %v1924_v2 = vmax.f32 %v1773_v8, 0.0  ;;  %v1922_v61 = vmax.f32 %v1880_v3, 0.0 }
 0x4ae   : > { %v1925_v1 = vmax.f32 %v1775_v29, 0.0  ;;  %v1923_v63 = vmax.f32 %v1882_v60, 0.0  ;;  %v1778_v10 = vpop.f32.mrb[48].mxu0  ;;  %v1885_v59 = vpop.f32.mrb[46].mxu1 }
 0x4af   : > { %1974 = vst [vmem:[%s2999_s20 + $0x10] sm:$0xff] %v1966_v0  ;;  %v1944_v11 = vmax.f32 %v2880_v31, %v1924_v2  ;;  %v1959_v13 = vmax.f32 %v1951_v58, %v1922_v61  ;;  %v1779_v16 = vadd.f32 %v1778_v10, %v2862_v36  ;;  %v1886_v20 = vadd.f32 %v1885_v59, %v2854_v14  ;;  %v1780_v21 = vpop.f32.mrb[49].mxu0  ;;  %v1887_v22 = vpop.f32.mrb[47].mxu1 }
 0x4b0   : > { %v1781_v49 = vadd.f32 %v1780_v21, %v2862_v36  ;;  %v1888_v24 = vadd.f32 %v1887_v22, %v2854_v14 }
 0x4b1   : > { %v1952_v52 = vmax.f32 %v1944_v11, %v1925_v1  ;;  %v1967_v25 = vmax.f32 %v1959_v13, %v1923_v63  ;;  %v1928_v47 = vmax.f32 %v1779_v16, 0.0  ;;  %v1926_v26 = vmax.f32 %v1886_v20, 0.0 }
 0x4b2   : > { %v1929_v27 = vmax.f32 %v1781_v49, 0.0  ;;  %v1927_v30 = vmax.f32 %v1888_v24, 0.0  ;;  %v1784_v9 = vpop.f32.mrb[50].mxu0  ;;  %v1891_v31 = vpop.f32.mrb[48].mxu1 }
 0x4b3   : > { %1975 = vst [vmem:[%s2999_s20 + $0x18] sm:$0xff] %v1967_v25  ;;  %v1945_v32 = vmax.f32 %v2886_v55, %v1928_v47  ;;  %v1960_v39 = vmax.f32 %v1952_v52, %v1926_v26  ;;  %v1785_v51 = vadd.f32 %v1784_v9, %v2870_v6  ;;  %v1892_v42 = vadd.f32 %v1891_v31, %v2862_v36  ;;  %v1786_v34 = vpop.f32.mrb[51].mxu0  ;;  %v1893_v4 = vpop.f32.mrb[49].mxu1 }
 0x4b4   : > { %v1787_v14 = vadd.f32 %v1786_v34, %v2870_v6  ;;  %v1894_v37 = vadd.f32 %v1893_v4, %v2862_v36 }
 0x4b5   : > { %v1953_v38 = vmax.f32 %v1945_v32, %v1929_v27  ;;  %v1968_v40 = vmax.f32 %v1960_v39, %v1927_v30  ;;  %v1932_v18 = vmax.f32 %v1785_v51, 0.0  ;;  %v1930_v43 = vmax.f32 %v1892_v42, 0.0 }
 0x4b6   : > { %v1933_v41 = vmax.f32 %v1787_v14, 0.0  ;;  %v1931_v15 = vmax.f32 %v1894_v37, 0.0  ;;  %v1790_v45 = vpop.f32.mrb[52].mxu0  ;;  %v1897_v55 = vpop.f32.mrb[50].mxu1 }
 0x4b7   : > { %1976 = vst [vmem:[%s2999_s20 + $0x20] sm:$0xff] %v1968_v40  ;;  %v1946_v46 = vmax.f32 %v2891_v19, %v1932_v18  ;;  %v1961_v48 = vmax.f32 %v1953_v38, %v1930_v43  ;;  %v1791_v44 = vadd.f32 %v1790_v45, %v2878_v28  ;;  %v1898_v50 = vadd.f32 %v1897_v55, %v2870_v6  ;;  %v1792_v53 = vpop.f32.mrb[53].mxu0  ;;  %v1899_v54 = vpop.f32.mrb[51].mxu1 }
 0x4b8   : > { %v1793_v36 = vadd.f32 %v1792_v53, %v2878_v28  ;;  %v1900_v5 = vadd.f32 %v1899_v54, %v2870_v6 }
 0x4b9   : > { %v1954_v56 = vmax.f32 %v1946_v46, %v1933_v41  ;;  %v1969_v57 = vmax.f32 %v1961_v48, %v1931_v15  ;;  %v1936_v12 = vmax.f32 %v1791_v44, 0.0  ;;  %v1934_v35 = vmax.f32 %v1898_v50, 0.0 }
 0x4ba   : > { %v1937_v23 = vmax.f32 %v1793_v36, 0.0  ;;  %v1935_v19 = vmax.f32 %v1900_v5, 0.0  ;;  %v1903_v62 = vpop.f32.mrb[52].mxu1 }
 0x4bb   : > { %1977 = vst [vmem:[%s2999_s20 + $0x28] sm:$0xff] %v1969_v57  ;;  %v1947_v8 = vmax.f32 %v2898_v33, %v1936_v12  ;;  %v1962_v3 = vmax.f32 %v1954_v56, %v1934_v35  ;;  %v1904_v7 = vadd.f32 %v1903_v62, %v2878_v28  ;;  %v1905_v17 = vpop.f32.mrb[53].mxu1 }
 0x4bc   : > { %v1906_v6 = vadd.f32 %v1905_v17, %v2878_v28 }
 0x4bd   : > { %v1955_v29 = vmax.f32 %v1947_v8, %v1937_v23  ;;  %v1970_v60 = vmax.f32 %v1962_v3, %v1935_v19  ;;  %v1938_v58 = vmax.f32 %v1904_v7, 0.0 }
 0x4be   : > { %v1939_v0 = vmax.f32 %v1906_v6, 0.0 }
 0x4bf   : > { %1978 = vst [vmem:[%s2999_s20 + $0x30] sm:$0xff] %v1970_v60  ;;  %v1963_v2 = vmax.f32 %v1955_v29, %v1938_v58 }
 0x4c1   : > { %v1971_v28 = vmax.f32 %v1963_v2, %v1939_v0 }
 0x4c3   : > { %1979 = vst [vmem:[%s2999_s20 + $0x38] sm:$0xff] %v1971_v28 }
 0x4c4   : > { %2354 = shalt.err (!%p2351_p5)
}
 0x4c5   : > { %s2355_s16 = scalar_lea.hbm %s3041_s26, 1024  ;;  %s2359_s21 = scalar_lea.hbm %s3102_s8, 2048 }
 0x4c6   : > { %p2356_p6 = scmp.ne.s32.totalorder %s3041_s26, %s2355_s16  ;;  %p2360_p10 = scmp.lt.u32.totalorder %s3041_s26, %s3102_s8 }
 0x4c7   : > { %p2361_p11 = scmp.lt.u32.totalorder %s2359_s21, %s2355_s16  ;;  %p2363_p13 = scmp.lt.u32.totalorder %s2355_s16, %s3041_s26 }
 0x4c8   : > { %p2357_p7 = pnand %p2356_p6, %p2512_p4 }
 0x4c9   : > { %p2362_p12 = por %p2361_p11, %p2360_p10 }
 0x4ca   : > { %p2358_p9 = pneg %p2357_p7 }
 0x4cb   : > { %p2364_p0 = por %p2363_p13, %p2362_p12 }
 0x4cd   : > { %p2365_p1 = pnand %p2364_p0, %p2358_p9 }
 0x4cf   : > { %2368 = shalt.err (!%p2365_p1)
}
 0x4d0   : > { %s2425_s30 = smov 128   ;;  %s2426_s11 = smov 8  }
 0x4d1   : > { %2279 = dma.vmem_to_hbm [thread:$0]  (%p2512_p4), %s3043_s22, 1024, %s3041_s26, %s3048_s25, %s2425_s30, %s2425_s30, %s2426_s11  }
 0x4d2 PF: > { %p2285_p2 = scmp.ge.s32.totalorder %s2419_s10, 2  ;;  %s2010_s12 = sand.u32 1, %s2399_s27  }
 0x4d3   : > { %s2011_s14 = scalar_lea.sflag [#allocation3], %s2010_s12 }
 0x4d4   : > { %p2282_p3 = pnand %p2285_p2, %p2519_p8 }
 0x4d6   : > { %2394 = dma.done.wait (!%p2282_p3), %s2011_s14, 1024  }
 0x4d7   : > { %2396 = vsyncadd (!%p2282_p3), %s2011_s14, 4294966272  ;;  %s21_s10 = sadd.s32 1, %s2419_s10   ;;  %s3105_s27 = smov %s2403_s28 }
 0x4d8   : > { %p18_p5 = scmp.ge.s32.totalorder %s21_s10, 4   ;;  %s3106_s28 = smov %s2407_s29 }
 0x4d9   : > { %s3107_s29 = smov %s2525_s18  ;;  %s3108_s30 = smov %s2415_s9 }
 0x4da   : > { %s3109_s9 = smov %s3111_s13  ;;  %20 = sbr.rel (!%p18_p5) target bundleno = 4 (0x4), region = 94 }
 0x4e1   :  { %2016 = vsyncpa [#allocation3], 1 }
 0x4e2   :  { %2018 = vsyncpa [#allocation3 + $0x1], 1 }

</bundles_post_ra>
